<compile_context>
chip_gen: v5e
topology: v5e:2x2
jax: 0.10.0
libtpu: 0.0.40
codegen_flags: <defaults>
</compile_context>

<pallas_src>
import jax
import jax.numpy as jnp
from jax.experimental import pallas as pl
from jax.experimental.pallas import tpu as pltpu


# ---------------------------------------------------------------------------
# Fused forward kernel (one image per grid step)
# ---------------------------------------------------------------------------

def _net_kernel(x_ref, t1_ref, t2_ref, cb1_ref, cb2_ref,
                p1r_ref, p1c_ref, p2r_ref, p2c_ref,
                w1r_ref, fb1_ref, w2_ref, fb2_ref, o_ref):
    f32 = jnp.float32
    bf16 = jnp.bfloat16

    x = x_ref[0]                                    # (28, 28) f32
    xb = x.astype(bf16)

    # ---- conv1 (1 -> 10, 5x5 valid): out layout (oh, ow*10 + oc) ----------
    acc1 = jnp.zeros((24, 240), f32)
    for ki in range(5):
        acc1 = acc1 + jnp.dot(xb[ki:ki + 24, :], t1_ref[ki],
                              preferred_element_type=f32)
    acc1 = acc1 + cb1_ref[...]                      # conv1 bias (tiled over ow)

    # ---- relu(max_pool2d(., 2)) -> (12, 12*10) -----------------------------
    rmax = jnp.maximum(jnp.dot(p1r_ref[0], acc1, preferred_element_type=f32),
                       jnp.dot(p1r_ref[1], acc1, preferred_element_type=f32))
    pooled1 = jnp.maximum(
        jnp.maximum(jnp.dot(rmax, p1c_ref[0], preferred_element_type=f32),
                    jnp.dot(rmax, p1c_ref[1], preferred_element_type=f32)),
        0.0)

    # ---- conv2 (10 -> 20, 5x5 valid): out layout (oh, ow*20 + oc) ----------
    # TODO(synk): Dropout2d is stochastic in training mode; eval-mode identity here.
    p1b = pooled1.astype(bf16)
    acc2 = jnp.zeros((8, 160), f32)
    for ki in range(5):
        acc2 = acc2 + jnp.dot(p1b[ki:ki + 8, :], t2_ref[ki],
                              preferred_element_type=f32)
    acc2 = acc2 + cb2_ref[...]                      # conv2 bias

    # ---- relu(max_pool2d(., 2)) -> (4, 4*20) -------------------------------
    rmax2 = jnp.maximum(jnp.dot(p2r_ref[0], acc2, preferred_element_type=f32),
                        jnp.dot(p2r_ref[1], acc2, preferred_element_type=f32))
    pooled2 = jnp.maximum(
        jnp.maximum(jnp.dot(rmax2, p2c_ref[0], preferred_element_type=f32),
                    jnp.dot(rmax2, p2c_ref[1], preferred_element_type=f32)),
        0.0)

    # ---- fc1 (320 -> 50) + relu --------------------------------------------
    # fc1 weight is pre-permuted to the (h, w*C+c) layout, so we contract the
    # pooled activation row-by-row: no flatten / transpose needed in-kernel.
    p2b = pooled2.astype(bf16)
    h1 = jnp.zeros((1, 50), f32)
    for h in range(4):
        h1 = h1 + jnp.dot(p2b[h:h + 1, :], w1r_ref[h],
                          preferred_element_type=f32)
    h1 = jnp.maximum(h1 + fb1_ref[...], 0.0)
    # TODO(synk): F.dropout is stochastic in training mode; eval-mode identity here.

    # ---- fc2 (50 -> 10) + relu + log_softmax -------------------------------
    z = jnp.dot(h1, w2_ref[...], preferred_element_type=f32) + fb2_ref[...]
    z = jnp.maximum(z, 0.0)
    m = jnp.max(z, axis=-1, keepdims=True)
    lse = m + jnp.log(jnp.sum(jnp.exp(z - m), axis=-1, keepdims=True))
    o_ref[0] = z - lse


# ---------------------------------------------------------------------------
# One-time weight preparation (host side, runs once)
# ---------------------------------------------------------------------------

def _conv_band_weights(w, in_w):
    """w: (OC, CIN, KH, KW) -> T: (KH, in_w*CIN, (in_w-KW+1)*OC) in bf16,
    where out[oh, ow*OC+oc] = sum_ki  in2d[oh+ki, :] @ T[ki]."""
    oc, cin, kh, kw = w.shape
    ow = in_w - kw + 1
    wi = jnp.arange(in_w)
    owi = jnp.arange(ow)
    kji = jnp.arange(kw)
    # mask[w_pos, ow, kj] = 1 iff w_pos == ow + kj
    mask = (wi[:, None, None] == owi[None, :, None] + kji[None, None, :]
            ).astype(w.dtype)
    t = jnp.einsum("wok,acik->iwcoa", mask, w)      # (kh, in_w, cin, ow, oc)
    return t.reshape(kh, in_w * cin, ow * oc).astype(jnp.bfloat16)


def _pool_row_select(h):
    """(2, h//2, h) 0/1 matrices picking even / odd rows."""
    r = jnp.arange(h // 2)
    hh = jnp.arange(h)
    even = (hh[None, :] == 2 * r[:, None]).astype(jnp.float32)
    odd = (hh[None, :] == 2 * r[:, None] + 1).astype(jnp.float32)
    return jnp.stack([even, odd])


def _pool_col_select(w, c):
    """(2, w*c, (w//2)*c) 0/1 matrices picking even / odd width groups
    (lane index = w*c + channel)."""
    wi = jnp.arange(w)
    pw = jnp.arange(w // 2)
    ci = jnp.arange(c)
    ceq = ci[None, :, None, None] == ci[None, None, None, :]
    even = ((wi[:, None, None, None] == 2 * pw[None, None, :, None]) & ceq)
    odd = ((wi[:, None, None, None] == 2 * pw[None, None, :, None] + 1) & ceq)
    even = even.astype(jnp.float32).reshape(w * c, (w // 2) * c)
    odd = odd.astype(jnp.float32).reshape(w * c, (w // 2) * c)
    return jnp.stack([even, odd])


def prepare_params(p):
    """Convert PyTorch-layout params into kernel-ready tensors (done once)."""
    # fc1 columns are NCHW-flattened (c*16 + h*4 + w); permute to (h, w*20+c).
    w1r = (p["fc1_w"].reshape(50, 20, 4, 4)        # (n, c, h, w)
           .transpose(2, 3, 1, 0)                  # (h, w, c, n)
           .reshape(4, 80, 50))
    return {
        "t1": _conv_band_weights(p["conv1_w"], 28),    # (5, 28, 240)  bf16
        "t2": _conv_band_weights(p["conv2_w"], 12),    # (5, 120, 160) bf16
        "cb1": jnp.tile(p["conv1_b"], 24)[None, :],    # (1, 240) f32
        "cb2": jnp.tile(p["conv2_b"], 8)[None, :],     # (1, 160) f32
        "p1r": _pool_row_select(24),                   # (2, 12, 24)
        "p1c": _pool_col_select(24, 10),               # (2, 240, 120)
        "p2r": _pool_row_select(8),                    # (2, 4, 8)
        "p2c": _pool_col_select(8, 20),                # (2, 160, 80)
        "w1r": w1r.astype(jnp.bfloat16),               # (4, 80, 50) bf16
        "fb1": p["fc1_b"][None, :],                    # (1, 50)
        "w2": p["fc2_w"].T,                            # (50, 10)
        "fb2": p["fc2_b"][None, :],                    # (1, 10)
    }


def init_params(key):
    """PyTorch-default-style init (uniform +-1/sqrt(fan_in))."""
    def uniform(k, shape, fan_in):
        bound = 1.0 / jnp.sqrt(float(fan_in))
        return jax.random.uniform(k, shape, jnp.float32, -bound, bound)

    ks = jax.random.split(key, 8)
    return {
        "conv1_w": uniform(ks[0], (10, 1, 5, 5), 1 * 5 * 5),
        "conv1_b": uniform(ks[1], (10,), 1 * 5 * 5),
        "conv2_w": uniform(ks[2], (20, 10, 5, 5), 10 * 5 * 5),
        "conv2_b": uniform(ks[3], (20,), 10 * 5 * 5),
        "fc1_w": uniform(ks[4], (50, 320), 320),
        "fc1_b": uniform(ks[5], (50,), 320),
        "fc2_w": uniform(ks[6], (10, 50), 50),
        "fc2_b": uniform(ks[7], (10,), 50),
    }


# ---------------------------------------------------------------------------
# Forward pass: single fused pallas_call, grid over batch
# ---------------------------------------------------------------------------

def _full_spec(a):
    n = a.ndim
    return pl.BlockSpec(a.shape, lambda b, _n=n: (0,) * _n)


@jax.jit
def net_forward(kp, x):
    # x: (B, 1, 28, 28) NCHW float32 (28x28 implied by the 320-dim fc1 input)
    B = x.shape[0]
    x3 = x.reshape(B, 28, 28)

    weights = (kp["t1"], kp["t2"], kp["cb1"], kp["cb2"],
               kp["p1r"], kp["p1c"], kp["p2r"], kp["p2c"],
               kp["w1r"], kp["fb1"], kp["w2"], kp["fb2"])

    in_specs = [pl.BlockSpec((1, 28, 28), lambda b: (b, 0, 0))]
    in_specs += [_full_spec(a) for a in weights]

    out = pl.pallas_call(
        _net_kernel,
        out_shape=jax.ShapeDtypeStruct((B, 1, 10), jnp.float32),
        grid=(B,),
        in_specs=in_specs,
        out_specs=pl.BlockSpec((1, 1, 10), lambda b: (b, 0, 0)),
        compiler_params=pltpu.CompilerParams(
            dimension_semantics=("parallel",)),
    )(x3, *weights)
    return out.reshape(B, 10)


if __name__ == "__main__":
    key = jax.random.PRNGKey(0)
    pkey, xkey = jax.random.split(key)
    params = init_params(pkey)
    kparams = prepare_params(params)          # one-time weight prep

    x = jax.random.normal(xkey, (2, 1, 28, 28), jnp.float32)
    out = jax.block_until_ready(net_forward(kparams, x))

    assert out.shape == (2, 10)
    # log-probabilities must exponentiate-and-sum to 1 per row
    assert jnp.allclose(jnp.sum(jnp.exp(out), axis=-1), 1.0, atol=1e-4)
    print("KERNEL_OK")
</pallas_src>

<mosaic_0001>
module attributes {stable_mosaic.version = 11 : i64} {
  func.func @_net_kernel(%arg0: i32, %arg1: memref<1x28x28xf32, #tpu.memory_space<vmem>>, %arg2: memref<5x28x240xbf16, #tpu.memory_space<vmem>>, %arg3: memref<5x120x160xbf16, #tpu.memory_space<vmem>>, %arg4: memref<1x240xf32, #tpu.memory_space<vmem>>, %arg5: memref<1x160xf32, #tpu.memory_space<vmem>>, %arg6: memref<2x12x24xf32, #tpu.memory_space<vmem>>, %arg7: memref<2x240x120xf32, #tpu.memory_space<vmem>>, %arg8: memref<2x4x8xf32, #tpu.memory_space<vmem>>, %arg9: memref<2x160x80xf32, #tpu.memory_space<vmem>>, %arg10: memref<4x80x50xbf16, #tpu.memory_space<vmem>>, %arg11: memref<1x50xf32, #tpu.memory_space<vmem>>, %arg12: memref<50x10xf32, #tpu.memory_space<vmem>>, %arg13: memref<1x10xf32, #tpu.memory_space<vmem>>, %arg14: memref<1x1x10xf32, #tpu.memory_space<vmem>>) attributes {dimension_semantics = [#tpu.dimension_semantics<parallel>], iteration_bounds = array<i64: 2>, scalar_prefetch = 0 : i64, scratch_operands = 0 : i64, tpu.core_type = #tpu.core_type<tc>, window_params = [{transform_indices = @transform_0, window_bounds = array<i64: 1, 28, 28>}, {pipeline_mode = #tpu.pipeline_mode<synchronous>, transform_indices = @transform_1, window_bounds = array<i64: 5, 28, 240>}, {pipeline_mode = #tpu.pipeline_mode<synchronous>, transform_indices = @transform_2, window_bounds = array<i64: 5, 120, 160>}, {pipeline_mode = #tpu.pipeline_mode<synchronous>, transform_indices = @transform_3, window_bounds = array<i64: 1, 240>}, {pipeline_mode = #tpu.pipeline_mode<synchronous>, transform_indices = @transform_4, window_bounds = array<i64: 1, 160>}, {pipeline_mode = #tpu.pipeline_mode<synchronous>, transform_indices = @transform_5, window_bounds = array<i64: 2, 12, 24>}, {pipeline_mode = #tpu.pipeline_mode<synchronous>, transform_indices = @transform_6, window_bounds = array<i64: 2, 240, 120>}, {pipeline_mode = #tpu.pipeline_mode<synchronous>, transform_indices = @transform_7, window_bounds = array<i64: 2, 4, 8>}, {pipeline_mode = #tpu.pipeline_mode<synchronous>, transform_indices = @transform_8, window_bounds = array<i64: 2, 160, 80>}, {pipeline_mode = #tpu.pipeline_mode<synchronous>, transform_indices = @transform_9, window_bounds = array<i64: 4, 80, 50>}, {pipeline_mode = #tpu.pipeline_mode<synchronous>, transform_indices = @transform_10, window_bounds = array<i64: 1, 50>}, {pipeline_mode = #tpu.pipeline_mode<synchronous>, transform_indices = @transform_11, window_bounds = array<i64: 50, 10>}, {pipeline_mode = #tpu.pipeline_mode<synchronous>, transform_indices = @transform_12, window_bounds = array<i64: 1, 10>}, {transform_indices = @transform_13, window_bounds = array<i64: 1, 1, 10>}]} {
    %c0 = arith.constant 0 : index
    %c0_0 = arith.constant 0 : index
    %c0_1 = arith.constant 0 : index
    %0 = vector.load %arg1[%c0, %c0_0, %c0_1] : memref<1x28x28xf32, #tpu.memory_space<vmem>>, vector<1x28x28xf32>
    %1 = vector.shape_cast %0 : vector<1x28x28xf32> to vector<28x28xf32>
    %2 = arith.truncf %1 : vector<28x28xf32> to vector<28x28xbf16>
    %cst = arith.constant 0.000000e+00 : f32
    %3 = vector.broadcast %cst : f32 to vector<24x240xf32>
    %4 = vector.extract_strided_slice %2 {offsets = [0, 0], sizes = [24, 28], strides = [1, 1]} : vector<28x28xbf16> to vector<24x28xbf16>
    %c0_2 = arith.constant 0 : index
    %c0_3 = arith.constant 0 : index
    %c0_4 = arith.constant 0 : index
    %5 = vector.load %arg2[%c0_2, %c0_3, %c0_4] : memref<5x28x240xbf16, #tpu.memory_space<vmem>>, vector<1x28x240xbf16>
    %6 = vector.shape_cast %5 : vector<1x28x240xbf16> to vector<28x240xbf16>
    %cst_5 = arith.constant dense<0.000000e+00> : vector<24x240xf32>
    %7 = tpu.matmul %4, %6, %cst_5 {dimension_numbers = #tpu.dot_dimension_numbers<[1], [0], [0], [1], [0, 0, 1, 1], [], []>} : vector<24x28xbf16>, vector<28x240xbf16>, vector<24x240xf32> -> vector<24x240xf32>
    %8 = arith.addf %3, %7 : vector<24x240xf32>
    %9 = vector.extract_strided_slice %2 {offsets = [1, 0], sizes = [24, 28], strides = [1, 1]} : vector<28x28xbf16> to vector<24x28xbf16>
    %c1 = arith.constant 1 : index
    %c0_6 = arith.constant 0 : index
    %c0_7 = arith.constant 0 : index
    %10 = vector.load %arg2[%c1, %c0_6, %c0_7] : memref<5x28x240xbf16, #tpu.memory_space<vmem>>, vector<1x28x240xbf16>
    %11 = vector.shape_cast %10 : vector<1x28x240xbf16> to vector<28x240xbf16>
    %cst_8 = arith.constant dense<0.000000e+00> : vector<24x240xf32>
    %12 = tpu.matmul %9, %11, %cst_8 {dimension_numbers = #tpu.dot_dimension_numbers<[1], [0], [0], [1], [0, 0, 1, 1], [], []>} : vector<24x28xbf16>, vector<28x240xbf16>, vector<24x240xf32> -> vector<24x240xf32>
    %13 = arith.addf %8, %12 : vector<24x240xf32>
    %14 = vector.extract_strided_slice %2 {offsets = [2, 0], sizes = [24, 28], strides = [1, 1]} : vector<28x28xbf16> to vector<24x28xbf16>
    %c2 = arith.constant 2 : index
    %c0_9 = arith.constant 0 : index
    %c0_10 = arith.constant 0 : index
    %15 = vector.load %arg2[%c2, %c0_9, %c0_10] : memref<5x28x240xbf16, #tpu.memory_space<vmem>>, vector<1x28x240xbf16>
    %16 = vector.shape_cast %15 : vector<1x28x240xbf16> to vector<28x240xbf16>
    %cst_11 = arith.constant dense<0.000000e+00> : vector<24x240xf32>
    %17 = tpu.matmul %14, %16, %cst_11 {dimension_numbers = #tpu.dot_dimension_numbers<[1], [0], [0], [1], [0, 0, 1, 1], [], []>} : vector<24x28xbf16>, vector<28x240xbf16>, vector<24x240xf32> -> vector<24x240xf32>
    %18 = arith.addf %13, %17 : vector<24x240xf32>
    %19 = vector.extract_strided_slice %2 {offsets = [3, 0], sizes = [24, 28], strides = [1, 1]} : vector<28x28xbf16> to vector<24x28xbf16>
    %c3 = arith.constant 3 : index
    %c0_12 = arith.constant 0 : index
    %c0_13 = arith.constant 0 : index
    %20 = vector.load %arg2[%c3, %c0_12, %c0_13] : memref<5x28x240xbf16, #tpu.memory_space<vmem>>, vector<1x28x240xbf16>
    %21 = vector.shape_cast %20 : vector<1x28x240xbf16> to vector<28x240xbf16>
    %cst_14 = arith.constant dense<0.000000e+00> : vector<24x240xf32>
    %22 = tpu.matmul %19, %21, %cst_14 {dimension_numbers = #tpu.dot_dimension_numbers<[1], [0], [0], [1], [0, 0, 1, 1], [], []>} : vector<24x28xbf16>, vector<28x240xbf16>, vector<24x240xf32> -> vector<24x240xf32>
    %23 = arith.addf %18, %22 : vector<24x240xf32>
    %24 = vector.extract_strided_slice %2 {offsets = [4, 0], sizes = [24, 28], strides = [1, 1]} : vector<28x28xbf16> to vector<24x28xbf16>
    %c4 = arith.constant 4 : index
    %c0_15 = arith.constant 0 : index
    %c0_16 = arith.constant 0 : index
    %25 = vector.load %arg2[%c4, %c0_15, %c0_16] : memref<5x28x240xbf16, #tpu.memory_space<vmem>>, vector<1x28x240xbf16>
    %26 = vector.shape_cast %25 : vector<1x28x240xbf16> to vector<28x240xbf16>
    %cst_17 = arith.constant dense<0.000000e+00> : vector<24x240xf32>
    %27 = tpu.matmul %24, %26, %cst_17 {dimension_numbers = #tpu.dot_dimension_numbers<[1], [0], [0], [1], [0, 0, 1, 1], [], []>} : vector<24x28xbf16>, vector<28x240xbf16>, vector<24x240xf32> -> vector<24x240xf32>
    %28 = arith.addf %23, %27 : vector<24x240xf32>
    %c0_18 = arith.constant 0 : index
    %c0_19 = arith.constant 0 : index
    %29 = vector.load %arg4[%c0_18, %c0_19] : memref<1x240xf32, #tpu.memory_space<vmem>>, vector<1x240xf32>
    %30 = vector.broadcast %29 : vector<1x240xf32> to vector<24x240xf32>
    %31 = arith.addf %28, %30 : vector<24x240xf32>
    %c0_20 = arith.constant 0 : index
    %c0_21 = arith.constant 0 : index
    %c0_22 = arith.constant 0 : index
    %32 = vector.load %arg6[%c0_20, %c0_21, %c0_22] : memref<2x12x24xf32, #tpu.memory_space<vmem>>, vector<1x12x24xf32>
    %33 = vector.shape_cast %32 : vector<1x12x24xf32> to vector<12x24xf32>
    %cst_23 = arith.constant dense<0.000000e+00> : vector<12x240xf32>
    %34 = tpu.matmul %33, %31, %cst_23 {dimension_numbers = #tpu.dot_dimension_numbers<[1], [0], [0], [1], [0, 0, 1, 1], [], []>} : vector<12x24xf32>, vector<24x240xf32>, vector<12x240xf32> -> vector<12x240xf32>
    %c1_24 = arith.constant 1 : index
    %c0_25 = arith.constant 0 : index
    %c0_26 = arith.constant 0 : index
    %35 = vector.load %arg6[%c1_24, %c0_25, %c0_26] : memref<2x12x24xf32, #tpu.memory_space<vmem>>, vector<1x12x24xf32>
    %36 = vector.shape_cast %35 : vector<1x12x24xf32> to vector<12x24xf32>
    %cst_27 = arith.constant dense<0.000000e+00> : vector<12x240xf32>
    %37 = tpu.matmul %36, %31, %cst_27 {dimension_numbers = #tpu.dot_dimension_numbers<[1], [0], [0], [1], [0, 0, 1, 1], [], []>} : vector<12x24xf32>, vector<24x240xf32>, vector<12x240xf32> -> vector<12x240xf32>
    %38 = arith.maximumf %34, %37 : vector<12x240xf32>
    %c0_28 = arith.constant 0 : index
    %c0_29 = arith.constant 0 : index
    %c0_30 = arith.constant 0 : index
    %39 = vector.load %arg7[%c0_28, %c0_29, %c0_30] : memref<2x240x120xf32, #tpu.memory_space<vmem>>, vector<1x240x120xf32>
    %40 = vector.shape_cast %39 : vector<1x240x120xf32> to vector<240x120xf32>
    %cst_31 = arith.constant dense<0.000000e+00> : vector<12x120xf32>
    %41 = tpu.matmul %38, %40, %cst_31 {dimension_numbers = #tpu.dot_dimension_numbers<[1], [0], [0], [1], [0, 0, 1, 1], [], []>} : vector<12x240xf32>, vector<240x120xf32>, vector<12x120xf32> -> vector<12x120xf32>
    %c1_32 = arith.constant 1 : index
    %c0_33 = arith.constant 0 : index
    %c0_34 = arith.constant 0 : index
    %42 = vector.load %arg7[%c1_32, %c0_33, %c0_34] : memref<2x240x120xf32, #tpu.memory_space<vmem>>, vector<1x240x120xf32>
    %43 = vector.shape_cast %42 : vector<1x240x120xf32> to vector<240x120xf32>
    %cst_35 = arith.constant dense<0.000000e+00> : vector<12x120xf32>
    %44 = tpu.matmul %38, %43, %cst_35 {dimension_numbers = #tpu.dot_dimension_numbers<[1], [0], [0], [1], [0, 0, 1, 1], [], []>} : vector<12x240xf32>, vector<240x120xf32>, vector<12x120xf32> -> vector<12x120xf32>
    %45 = arith.maximumf %41, %44 : vector<12x120xf32>
    %cst_36 = arith.constant 0.000000e+00 : f32
    %46 = vector.broadcast %cst_36 : f32 to vector<12x120xf32>
    %47 = arith.maximumf %45, %46 : vector<12x120xf32>
    %48 = arith.truncf %47 : vector<12x120xf32> to vector<12x120xbf16>
    %cst_37 = arith.constant 0.000000e+00 : f32
    %49 = vector.broadcast %cst_37 : f32 to vector<8x160xf32>
    %50 = vector.extract_strided_slice %48 {offsets = [0, 0], sizes = [8, 120], strides = [1, 1]} : vector<12x120xbf16> to vector<8x120xbf16>
    %c0_38 = arith.constant 0 : index
    %c0_39 = arith.constant 0 : index
    %c0_40 = arith.constant 0 : index
    %51 = vector.load %arg3[%c0_38, %c0_39, %c0_40] : memref<5x120x160xbf16, #tpu.memory_space<vmem>>, vector<1x120x160xbf16>
    %52 = vector.shape_cast %51 : vector<1x120x160xbf16> to vector<120x160xbf16>
    %cst_41 = arith.constant dense<0.000000e+00> : vector<8x160xf32>
    %53 = tpu.matmul %50, %52, %cst_41 {dimension_numbers = #tpu.dot_dimension_numbers<[1], [0], [0], [1], [0, 0, 1, 1], [], []>} : vector<8x120xbf16>, vector<120x160xbf16>, vector<8x160xf32> -> vector<8x160xf32>
    %54 = arith.addf %49, %53 : vector<8x160xf32>
    %55 = vector.extract_strided_slice %48 {offsets = [1, 0], sizes = [8, 120], strides = [1, 1]} : vector<12x120xbf16> to vector<8x120xbf16>
    %c1_42 = arith.constant 1 : index
    %c0_43 = arith.constant 0 : index
    %c0_44 = arith.constant 0 : index
    %56 = vector.load %arg3[%c1_42, %c0_43, %c0_44] : memref<5x120x160xbf16, #tpu.memory_space<vmem>>, vector<1x120x160xbf16>
    %57 = vector.shape_cast %56 : vector<1x120x160xbf16> to vector<120x160xbf16>
    %cst_45 = arith.constant dense<0.000000e+00> : vector<8x160xf32>
    %58 = tpu.matmul %55, %57, %cst_45 {dimension_numbers = #tpu.dot_dimension_numbers<[1], [0], [0], [1], [0, 0, 1, 1], [], []>} : vector<8x120xbf16>, vector<120x160xbf16>, vector<8x160xf32> -> vector<8x160xf32>
    %59 = arith.addf %54, %58 : vector<8x160xf32>
    %60 = vector.extract_strided_slice %48 {offsets = [2, 0], sizes = [8, 120], strides = [1, 1]} : vector<12x120xbf16> to vector<8x120xbf16>
    %c2_46 = arith.constant 2 : index
    %c0_47 = arith.constant 0 : index
    %c0_48 = arith.constant 0 : index
    %61 = vector.load %arg3[%c2_46, %c0_47, %c0_48] : memref<5x120x160xbf16, #tpu.memory_space<vmem>>, vector<1x120x160xbf16>
    %62 = vector.shape_cast %61 : vector<1x120x160xbf16> to vector<120x160xbf16>
    %cst_49 = arith.constant dense<0.000000e+00> : vector<8x160xf32>
    %63 = tpu.matmul %60, %62, %cst_49 {dimension_numbers = #tpu.dot_dimension_numbers<[1], [0], [0], [1], [0, 0, 1, 1], [], []>} : vector<8x120xbf16>, vector<120x160xbf16>, vector<8x160xf32> -> vector<8x160xf32>
    %64 = arith.addf %59, %63 : vector<8x160xf32>
    %65 = vector.extract_strided_slice %48 {offsets = [3, 0], sizes = [8, 120], strides = [1, 1]} : vector<12x120xbf16> to vector<8x120xbf16>
    %c3_50 = arith.constant 3 : index
    %c0_51 = arith.constant 0 : index
    %c0_52 = arith.constant 0 : index
    %66 = vector.load %arg3[%c3_50, %c0_51, %c0_52] : memref<5x120x160xbf16, #tpu.memory_space<vmem>>, vector<1x120x160xbf16>
    %67 = vector.shape_cast %66 : vector<1x120x160xbf16> to vector<120x160xbf16>
    %cst_53 = arith.constant dense<0.000000e+00> : vector<8x160xf32>
    %68 = tpu.matmul %65, %67, %cst_53 {dimension_numbers = #tpu.dot_dimension_numbers<[1], [0], [0], [1], [0, 0, 1, 1], [], []>} : vector<8x120xbf16>, vector<120x160xbf16>, vector<8x160xf32> -> vector<8x160xf32>
    %69 = arith.addf %64, %68 : vector<8x160xf32>
    %70 = vector.extract_strided_slice %48 {offsets = [4, 0], sizes = [8, 120], strides = [1, 1]} : vector<12x120xbf16> to vector<8x120xbf16>
    %c4_54 = arith.constant 4 : index
    %c0_55 = arith.constant 0 : index
    %c0_56 = arith.constant 0 : index
    %71 = vector.load %arg3[%c4_54, %c0_55, %c0_56] : memref<5x120x160xbf16, #tpu.memory_space<vmem>>, vector<1x120x160xbf16>
    %72 = vector.shape_cast %71 : vector<1x120x160xbf16> to vector<120x160xbf16>
    %cst_57 = arith.constant dense<0.000000e+00> : vector<8x160xf32>
    %73 = tpu.matmul %70, %72, %cst_57 {dimension_numbers = #tpu.dot_dimension_numbers<[1], [0], [0], [1], [0, 0, 1, 1], [], []>} : vector<8x120xbf16>, vector<120x160xbf16>, vector<8x160xf32> -> vector<8x160xf32>
    %74 = arith.addf %69, %73 : vector<8x160xf32>
    %c0_58 = arith.constant 0 : index
    %c0_59 = arith.constant 0 : index
    %75 = vector.load %arg5[%c0_58, %c0_59] : memref<1x160xf32, #tpu.memory_space<vmem>>, vector<1x160xf32>
    %76 = vector.broadcast %75 : vector<1x160xf32> to vector<8x160xf32>
    %77 = arith.addf %74, %76 : vector<8x160xf32>
    %c0_60 = arith.constant 0 : index
    %c0_61 = arith.constant 0 : index
    %c0_62 = arith.constant 0 : index
    %78 = vector.load %arg8[%c0_60, %c0_61, %c0_62] : memref<2x4x8xf32, #tpu.memory_space<vmem>>, vector<1x4x8xf32>
    %79 = vector.shape_cast %78 : vector<1x4x8xf32> to vector<4x8xf32>
    %cst_63 = arith.constant dense<0.000000e+00> : vector<4x160xf32>
    %80 = tpu.matmul %79, %77, %cst_63 {dimension_numbers = #tpu.dot_dimension_numbers<[1], [0], [0], [1], [0, 0, 1, 1], [], []>} : vector<4x8xf32>, vector<8x160xf32>, vector<4x160xf32> -> vector<4x160xf32>
    %c1_64 = arith.constant 1 : index
    %c0_65 = arith.constant 0 : index
    %c0_66 = arith.constant 0 : index
    %81 = vector.load %arg8[%c1_64, %c0_65, %c0_66] : memref<2x4x8xf32, #tpu.memory_space<vmem>>, vector<1x4x8xf32>
    %82 = vector.shape_cast %81 : vector<1x4x8xf32> to vector<4x8xf32>
    %cst_67 = arith.constant dense<0.000000e+00> : vector<4x160xf32>
    %83 = tpu.matmul %82, %77, %cst_67 {dimension_numbers = #tpu.dot_dimension_numbers<[1], [0], [0], [1], [0, 0, 1, 1], [], []>} : vector<4x8xf32>, vector<8x160xf32>, vector<4x160xf32> -> vector<4x160xf32>
    %84 = arith.maximumf %80, %83 : vector<4x160xf32>
    %c0_68 = arith.constant 0 : index
    %c0_69 = arith.constant 0 : index
    %c0_70 = arith.constant 0 : index
    %85 = vector.load %arg9[%c0_68, %c0_69, %c0_70] : memref<2x160x80xf32, #tpu.memory_space<vmem>>, vector<1x160x80xf32>
    %86 = vector.shape_cast %85 : vector<1x160x80xf32> to vector<160x80xf32>
    %cst_71 = arith.constant dense<0.000000e+00> : vector<4x80xf32>
    %87 = tpu.matmul %84, %86, %cst_71 {dimension_numbers = #tpu.dot_dimension_numbers<[1], [0], [0], [1], [0, 0, 1, 1], [], []>} : vector<4x160xf32>, vector<160x80xf32>, vector<4x80xf32> -> vector<4x80xf32>
    %c1_72 = arith.constant 1 : index
    %c0_73 = arith.constant 0 : index
    %c0_74 = arith.constant 0 : index
    %88 = vector.load %arg9[%c1_72, %c0_73, %c0_74] : memref<2x160x80xf32, #tpu.memory_space<vmem>>, vector<1x160x80xf32>
    %89 = vector.shape_cast %88 : vector<1x160x80xf32> to vector<160x80xf32>
    %cst_75 = arith.constant dense<0.000000e+00> : vector<4x80xf32>
    %90 = tpu.matmul %84, %89, %cst_75 {dimension_numbers = #tpu.dot_dimension_numbers<[1], [0], [0], [1], [0, 0, 1, 1], [], []>} : vector<4x160xf32>, vector<160x80xf32>, vector<4x80xf32> -> vector<4x80xf32>
    %91 = arith.maximumf %87, %90 : vector<4x80xf32>
    %cst_76 = arith.constant 0.000000e+00 : f32
    %92 = vector.broadcast %cst_76 : f32 to vector<4x80xf32>
    %93 = arith.maximumf %91, %92 : vector<4x80xf32>
    %94 = arith.truncf %93 : vector<4x80xf32> to vector<4x80xbf16>
    %cst_77 = arith.constant 0.000000e+00 : f32
    %95 = vector.broadcast %cst_77 : f32 to vector<1x50xf32>
    %96 = vector.extract_strided_slice %94 {offsets = [0, 0], sizes = [1, 80], strides = [1, 1]} : vector<4x80xbf16> to vector<1x80xbf16>
    %c0_78 = arith.constant 0 : index
    %c0_79 = arith.constant 0 : index
    %c0_80 = arith.constant 0 : index
    %97 = vector.load %arg10[%c0_78, %c0_79, %c0_80] : memref<4x80x50xbf16, #tpu.memory_space<vmem>>, vector<1x80x50xbf16>
    %98 = vector.shape_cast %97 : vector<1x80x50xbf16> to vector<80x50xbf16>
    %cst_81 = arith.constant dense<0.000000e+00> : vector<1x50xf32>
    %99 = tpu.matmul %96, %98, %cst_81 {dimension_numbers = #tpu.dot_dimension_numbers<[1], [0], [0], [1], [0, 0, 1, 1], [], []>} : vector<1x80xbf16>, vector<80x50xbf16>, vector<1x50xf32> -> vector<1x50xf32>
    %100 = arith.addf %95, %99 : vector<1x50xf32>
    %101 = vector.extract_strided_slice %94 {offsets = [1, 0], sizes = [1, 80], strides = [1, 1]} : vector<4x80xbf16> to vector<1x80xbf16>
    %c1_82 = arith.constant 1 : index
    %c0_83 = arith.constant 0 : index
    %c0_84 = arith.constant 0 : index
    %102 = vector.load %arg10[%c1_82, %c0_83, %c0_84] : memref<4x80x50xbf16, #tpu.memory_space<vmem>>, vector<1x80x50xbf16>
    %103 = vector.shape_cast %102 : vector<1x80x50xbf16> to vector<80x50xbf16>
    %cst_85 = arith.constant dense<0.000000e+00> : vector<1x50xf32>
    %104 = tpu.matmul %101, %103, %cst_85 {dimension_numbers = #tpu.dot_dimension_numbers<[1], [0], [0], [1], [0, 0, 1, 1], [], []>} : vector<1x80xbf16>, vector<80x50xbf16>, vector<1x50xf32> -> vector<1x50xf32>
    %105 = arith.addf %100, %104 : vector<1x50xf32>
    %106 = vector.extract_strided_slice %94 {offsets = [2, 0], sizes = [1, 80], strides = [1, 1]} : vector<4x80xbf16> to vector<1x80xbf16>
    %c2_86 = arith.constant 2 : index
    %c0_87 = arith.constant 0 : index
    %c0_88 = arith.constant 0 : index
    %107 = vector.load %arg10[%c2_86, %c0_87, %c0_88] : memref<4x80x50xbf16, #tpu.memory_space<vmem>>, vector<1x80x50xbf16>
    %108 = vector.shape_cast %107 : vector<1x80x50xbf16> to vector<80x50xbf16>
    %cst_89 = arith.constant dense<0.000000e+00> : vector<1x50xf32>
    %109 = tpu.matmul %106, %108, %cst_89 {dimension_numbers = #tpu.dot_dimension_numbers<[1], [0], [0], [1], [0, 0, 1, 1], [], []>} : vector<1x80xbf16>, vector<80x50xbf16>, vector<1x50xf32> -> vector<1x50xf32>
    %110 = arith.addf %105, %109 : vector<1x50xf32>
    %111 = vector.extract_strided_slice %94 {offsets = [3, 0], sizes = [1, 80], strides = [1, 1]} : vector<4x80xbf16> to vector<1x80xbf16>
    %c3_90 = arith.constant 3 : index
    %c0_91 = arith.constant 0 : index
    %c0_92 = arith.constant 0 : index
    %112 = vector.load %arg10[%c3_90, %c0_91, %c0_92] : memref<4x80x50xbf16, #tpu.memory_space<vmem>>, vector<1x80x50xbf16>
    %113 = vector.shape_cast %112 : vector<1x80x50xbf16> to vector<80x50xbf16>
    %cst_93 = arith.constant dense<0.000000e+00> : vector<1x50xf32>
    %114 = tpu.matmul %111, %113, %cst_93 {dimension_numbers = #tpu.dot_dimension_numbers<[1], [0], [0], [1], [0, 0, 1, 1], [], []>} : vector<1x80xbf16>, vector<80x50xbf16>, vector<1x50xf32> -> vector<1x50xf32>
    %115 = arith.addf %110, %114 : vector<1x50xf32>
    %c0_94 = arith.constant 0 : index
    %c0_95 = arith.constant 0 : index
    %116 = vector.load %arg11[%c0_94, %c0_95] : memref<1x50xf32, #tpu.memory_space<vmem>>, vector<1x50xf32>
    %117 = arith.addf %115, %116 : vector<1x50xf32>
    %cst_96 = arith.constant 0.000000e+00 : f32
    %118 = vector.broadcast %cst_96 : f32 to vector<1x50xf32>
    %119 = arith.maximumf %117, %118 : vector<1x50xf32>
    %c0_97 = arith.constant 0 : index
    %c0_98 = arith.constant 0 : index
    %120 = vector.load %arg12[%c0_97, %c0_98] : memref<50x10xf32, #tpu.memory_space<vmem>>, vector<50x10xf32>
    %cst_99 = arith.constant dense<0.000000e+00> : vector<1x10xf32>
    %121 = tpu.matmul %119, %120, %cst_99 {dimension_numbers = #tpu.dot_dimension_numbers<[1], [0], [0], [1], [0, 0, 1, 1], [], []>} : vector<1x50xf32>, vector<50x10xf32>, vector<1x10xf32> -> vector<1x10xf32>
    %c0_100 = arith.constant 0 : index
    %c0_101 = arith.constant 0 : index
    %122 = vector.load %arg13[%c0_100, %c0_101] : memref<1x10xf32, #tpu.memory_space<vmem>>, vector<1x10xf32>
    %123 = arith.addf %121, %122 : vector<1x10xf32>
    %cst_102 = arith.constant 0.000000e+00 : f32
    %124 = vector.broadcast %cst_102 : f32 to vector<1x10xf32>
    %125 = arith.maximumf %123, %124 : vector<1x10xf32>
    %cst_103 = arith.constant dense<0xFF800000> : vector<1xf32>
    %126 = vector.multi_reduction <maximumf>, %125, %cst_103 [1] : vector<1x10xf32> to vector<1xf32>
    %127 = vector.shape_cast %126 : vector<1xf32> to vector<1x1xf32>
    %128 = vector.broadcast %127 : vector<1x1xf32> to vector<1x10xf32>
    %129 = arith.subf %125, %128 : vector<1x10xf32>
    %130 = math.exp %129 : vector<1x10xf32>
    %cst_104 = arith.constant dense<0.000000e+00> : vector<1xf32>
    %131 = vector.multi_reduction <add>, %130, %cst_104 [1] : vector<1x10xf32> to vector<1xf32>
    %132 = vector.shape_cast %131 : vector<1xf32> to vector<1x1xf32>
    %133 = math.log %132 : vector<1x1xf32>
    %134 = arith.addf %127, %133 : vector<1x1xf32>
    %135 = vector.broadcast %134 : vector<1x1xf32> to vector<1x10xf32>
    %136 = arith.subf %125, %135 : vector<1x10xf32>
    %c0_105 = arith.constant 0 : index
    %c0_106 = arith.constant 0 : index
    %c0_107 = arith.constant 0 : index
    %137 = vector.load %arg14[%c0_105, %c0_106, %c0_107] : memref<1x1x10xf32, #tpu.memory_space<vmem>>, vector<1x1x10xf32>
    %138 = vector.shape_cast %137 : vector<1x1x10xf32> to vector<1x10xf32>
    %139 = vector.shape_cast %136 : vector<1x10xf32> to vector<1x1x10xf32>
    tpu.vector_store %arg14[%c0_105, %c0_106, %c0_107], %139 {strides = array<i32>} : memref<1x1x10xf32, #tpu.memory_space<vmem>>, vector<1x1x10xf32>,
    return
  }
  func.func @transform_0(%arg0: i32) -> (i32, i32, i32) {
    %c0_i32 = arith.constant 0 : i32
    %c0_i32_0 = arith.constant 0 : i32
    %c0_i32_1 = arith.constant 0 : i32
    return %arg0, %c0_i32, %c0_i32_0 : i32, i32, i32
  }
  func.func @transform_1(%arg0: i32) -> (i32, i32, i32) {
    %c0_i32 = arith.constant 0 : i32
    %c0_i32_0 = arith.constant 0 : i32
    %c0_i32_1 = arith.constant 0 : i32
    %c0_i32_2 = arith.constant 0 : i32
    return %c0_i32, %c0_i32_0, %c0_i32_1 : i32, i32, i32
  }
  func.func @transform_2(%arg0: i32) -> (i32, i32, i32) {
    %c0_i32 = arith.constant 0 : i32
    %c0_i32_0 = arith.constant 0 : i32
    %c0_i32_1 = arith.constant 0 : i32
    %c0_i32_2 = arith.constant 0 : i32
    return %c0_i32, %c0_i32_0, %c0_i32_1 : i32, i32, i32
  }
  func.func @transform_3(%arg0: i32) -> (i32, i32) {
    %c0_i32 = arith.constant 0 : i32
    %c0_i32_0 = arith.constant 0 : i32
    %c0_i32_1 = arith.constant 0 : i32
    return %c0_i32, %c0_i32_0 : i32, i32
  }
  func.func @transform_4(%arg0: i32) -> (i32, i32) {
    %c0_i32 = arith.constant 0 : i32
    %c0_i32_0 = arith.constant 0 : i32
    %c0_i32_1 = arith.constant 0 : i32
    return %c0_i32, %c0_i32_0 : i32, i32
  }
  func.func @transform_5(%arg0: i32) -> (i32, i32, i32) {
    %c0_i32 = arith.constant 0 : i32
    %c0_i32_0 = arith.constant 0 : i32
    %c0_i32_1 = arith.constant 0 : i32
    %c0_i32_2 = arith.constant 0 : i32
    return %c0_i32, %c0_i32_0, %c0_i32_1 : i32, i32, i32
  }
  func.func @transform_6(%arg0: i32) -> (i32, i32, i32) {
    %c0_i32 = arith.constant 0 : i32
    %c0_i32_0 = arith.constant 0 : i32
    %c0_i32_1 = arith.constant 0 : i32
    %c0_i32_2 = arith.constant 0 : i32
    return %c0_i32, %c0_i32_0, %c0_i32_1 : i32, i32, i32
  }
  func.func @transform_7(%arg0: i32) -> (i32, i32, i32) {
    %c0_i32 = arith.constant 0 : i32
    %c0_i32_0 = arith.constant 0 : i32
    %c0_i32_1 = arith.constant 0 : i32
    %c0_i32_2 = arith.constant 0 : i32
    return %c0_i32, %c0_i32_0, %c0_i32_1 : i32, i32, i32
  }
  func.func @transform_8(%arg0: i32) -> (i32, i32, i32) {
    %c0_i32 = arith.constant 0 : i32
    %c0_i32_0 = arith.constant 0 : i32
    %c0_i32_1 = arith.constant 0 : i32
    %c0_i32_2 = arith.constant 0 : i32
    return %c0_i32, %c0_i32_0, %c0_i32_1 : i32, i32, i32
  }
  func.func @transform_9(%arg0: i32) -> (i32, i32, i32) {
    %c0_i32 = arith.constant 0 : i32
    %c0_i32_0 = arith.constant 0 : i32
    %c0_i32_1 = arith.constant 0 : i32
    %c0_i32_2 = arith.constant 0 : i32
    return %c0_i32, %c0_i32_0, %c0_i32_1 : i32, i32, i32
  }
  func.func @transform_10(%arg0: i32) -> (i32, i32) {
    %c0_i32 = arith.constant 0 : i32
    %c0_i32_0 = arith.constant 0 : i32
    %c0_i32_1 = arith.constant 0 : i32
    return %c0_i32, %c0_i32_0 : i32, i32
  }
  func.func @transform_11(%arg0: i32) -> (i32, i32) {
    %c0_i32 = arith.constant 0 : i32
    %c0_i32_0 = arith.constant 0 : i32
    %c0_i32_1 = arith.constant 0 : i32
    return %c0_i32, %c0_i32_0 : i32, i32
  }
  func.func @transform_12(%arg0: i32) -> (i32, i32) {
    %c0_i32 = arith.constant 0 : i32
    %c0_i32_0 = arith.constant 0 : i32
    %c0_i32_1 = arith.constant 0 : i32
    return %c0_i32, %c0_i32_0 : i32, i32
  }
  func.func @transform_13(%arg0: i32) -> (i32, i32, i32) {
    %c0_i32 = arith.constant 0 : i32
    %c0_i32_0 = arith.constant 0 : i32
    %c0_i32_1 = arith.constant 0 : i32
    return %arg0, %c0_i32, %c0_i32_0 : i32, i32, i32
  }
}

</mosaic_0001>

<bundles_post_ra>
// kernel: net_forward.1
= control target key start
LH: loop header
LB: loop body
LE: loop exit
PB: predicated region body
PF: predicated region fallthrough
CT: control target
= control target key end

     0   :  { %18 = vsyncpa [#allocation3], 0  ;;  %s4497_s0 = inlined_call_operand.vmem [shape: f32[2,28,28], index: 0, kind: input, shape index: {}]   ;;  %s4498_s1 = inlined_call_operand.vmem [shape: bf16[5,28,240], index: 1, kind: input, shape index: {}]   ;;  %s4499_s2 = inlined_call_operand.vmem [shape: bf16[5,120,160], index: 2, kind: input, shape index: {}]   ;;  %s4500_s3 = inlined_call_operand.vmem [shape: f32[1,240], index: 3, kind: input, shape index: {}]   ;;  %s4501_s4 = inlined_call_operand.vmem [shape: f32[1,160], index: 4, kind: input, shape index: {}]   ;;  %s4502_s5 = inlined_call_operand.vmem [shape: f32[2,12,24], index: 5, kind: input, shape index: {}]   ;;  %s4503_s6 = inlined_call_operand.vmem [shape: f32[2,240,120], index: 6, kind: input, shape index: {}]   ;;  %s4504_s7 = inlined_call_operand.vmem [shape: f32[2,4,8], index: 7, kind: input, shape index: {}]   ;;  %s4505_s8 = inlined_call_operand.vmem [shape: f32[2,160,80], index: 8, kind: input, shape index: {}]   ;;  %s4506_s9 = inlined_call_operand.vmem [shape: bf16[4,80,50], index: 9, kind: input, shape index: {}]   ;;  %s4507_s10 = inlined_call_operand.vmem [shape: f32[1,50], index: 10, kind: input, shape index: {}]   ;;  %s4508_s11 = inlined_call_operand.vmem [shape: f32[50,10], index: 11, kind: input, shape index: {}]   ;;  %s4509_s12 = inlined_call_operand.vmem [shape: f32[1,10], index: 12, kind: input, shape index: {}]   ;;  %s4510_s13 = inlined_call_operand.hbm [shape: f32[2,1,10], index: 13, kind: output, shape index: {}]  }
   0x1   :  { %20 = vsyncpa [#allocation3 + $0x1], 0  ;;  %s3347_s25 = smov 0   ;;  %s3349_s26 = smov 0  }
   0x2   :  { %s3351_s27 = smov 0   ;;  %s3353_s28 = smov 0  }
   0x3 LB: > { %4515 = sst [smem:[#allocation5_spill]] %s3271_s27  ;;  %s3368_s29 = sadd.s32 4294967295, %s3275_s28   ;;  %s3275_s28 = sphi %s3353_s28, %s4522_s28   ;;  %s3271_s27 = sphi %s3351_s27, %s4524_s27   ;;  %s3267_s26 = sphi %s3349_s26, %s4526_s26   ;;  %s3263_s25 = sphi %s3347_s25, %s4525_s25  }
   0x4   : > { %s2398_s30 = sadd.s32 4294967294, %s3275_s28   ;;  %s3372_s14 = sadd.s32 1, %s3275_s28  }
   0x5   : > { %4516 = sst [smem:[#allocation6_spill]] %s3372_s14  ;;  %s311_s15 = sadd.s32 1, %s3271_s27 }
   0x6   : > { %s308_s16 = ssub.s32 %s3275_s28, %s3372_s14  ;;  %p321_p0 = scmp.ne.s32.totalorder %s3271_s27, %s3267_s26 }
   0x7   : > { %p309_p1 = scmp.eq.s32.totalorder %s308_s16, 0  ;;  %p322_p2 = scmp.eq.s32.totalorder %s3368_s29, 1 }
   0x8   : > { %p327_p3 = scmp.ne.s32.totalorder %s3267_s26, %s3263_s25  ;;  %p328_p4 = scmp.eq.s32.totalorder %s2398_s30, 1 }
   0x9   : > { %s3383_s17 = scalar_select %p309_p1, %s3271_s27, %s311_s15  }
   0xa   : > { %p3385_p5 = por %p322_p2, %p321_p0  ;;  %p3389_p6 = por %p328_p4, %p327_p3 }
   0xb   : > { %4517 = sst [smem:[#allocation7_spill]] %s3383_s17  ;;  %p2401_p7 = scmp.ge.s32.totalorder %s3275_s28, 1 }
   0xc   : > { %s4519_s19 = scalar_select %p3389_p6, 1, 0 }
   0xd   : > { %p390_p8 = scmp.lt.s32.totalorder %s3275_s28, 3 }
   0xe   : > { %4520 = sst [smem:[#allocation8_spill]] %s4519_s19 }
   0xf   : > { %p391_p9 = pnand %p2401_p7, %p390_p8 }
  0x10   : > { %p433_p10 = scmp.lt.s32.totalorder (!%p391_p9), %s3368_s29, 1  ;;  %s2339_s30 = scalar_lea.hbm (!%p391_p9), %s4510_s13, %s3368_s29 }
  0x11   : > { %394 = sbr.rel (%p391_p9) target bundleno = 1558 (0x616), region = 72  ;;  %s2343_s16 = sshll.u32 (!%p391_p9), %s2339_s30, 4  ;;  %s2344_s16 = int_to_ptr.hbm [resolvable:$true] %s2343_s16 }
  0x16   : > { %v2438_v0 = vld [vmem:[%s4498_s1 + $0x10] sm:$0xf]  ;;  %v3063_v1 = vld [vmem:[%s4498_s1 + $0x14] sm:$0x30]  ;;  %vm507_vm0 = vcmask 1045504   ;;  %s434_s27 = scalar_select %p433_p10, %s3368_s29, 1 }
  0x17   : > { %v2439_v2 = vor.u32 %v3063_v1, %v2438_v0  ;;  %v3062_v3 = vld [vmem:[%s4498_s1 + $0x14] sm:$0xf]  ;;  %v2440_v4 = vld [vmem:[%s4498_s1 + $0x18] sm:$0x30]  ;;  %v2430_v5 = vld [vmem:[%s4498_s1] sm:$0xf] }
  0x18   : > { %v2443_v6 = vor.u32 %v3062_v3, %v2440_v4  ;;  %v3061_v7 = vld [vmem:[%s4498_s1 + $0x4] sm:$0xf0]  ;;  %v3060_v8 = vld [vmem:[%s4498_s1 + $0x4] sm:$0xf]  ;;  %v2432_v9 = vld [vmem:[%s4498_s1 + $0x8] sm:$0xf0] }
  0x19   : > { %v575_v10 = vsel %vm507_vm0, %v2439_v2, 0  ;;  %v2418_v11 = vld [vmem:[%s4498_s1 + $0x30] sm:$0xf]  ;;  %v3067_v12 = vld [vmem:[%s4498_s1 + $0x34] sm:$0x30]  ;;  %v2431_v14 = vor.u32 %v3061_v7, %v2430_v5  ;;  %v2435_v18 = vor.u32 %v3060_v8, %v2432_v9  ;;  %s3059_s23 = sshll.u32 %s434_s27, 5 }
  0x1a   : > { %586 = vmatpush.bf16.msra.mxu2 %v575_v10  ;;  %v578_v13 = vsel %vm507_vm0, %v2443_v6, 0  ;;  %v2419_v15 = vor.u32 %v3067_v12, %v2418_v11  ;;  %v3066_v16 = vld [vmem:[%s4498_s1 + $0x34] sm:$0xf]  ;;  %v2420_v17 = vld [vmem:[%s4498_s1 + $0x38] sm:$0x30]  ;;  %s437_s21 = scalar_lea.vmem %s4497_s0, %s3059_s23  ;;  %vm500_vm1 = vcmask 228352  }
  0x1b   : > { %604 = vmatpush.bf16.msra.mxu3 %v578_v13  ;;  %v2423_v19 = vor.u32 %v3066_v16, %v2420_v17  ;;  %v2410_v20 = vld [vmem:[%s4498_s1 + $0x20] sm:$0xf]  ;;  %v3065_v21 = vld [vmem:[%s4498_s1 + $0x24] sm:$0xf0]  ;;  %v3064_v23 = vld [vmem:[%s4498_s1 + $0x24] sm:$0xf] }
  0x1c   : > { %v509_v22 = vsel %vm507_vm0, %v2419_v15, 0  ;;  %v2412_v24 = vld [vmem:[%s4498_s1 + $0x28] sm:$0xf0]  ;;  %v439_v26 = vld [vmem:[%s437_s21] sm:$0xff]  ;;  %v2411_v28 = vor.u32 %v3065_v21, %v2410_v20  ;;  %v441_v30 = vld [vmem:[%s437_s21 + $0x10] sm:$0xff]  ;;  %vm621_vm4 = vcmask 1046528  }
  0x1d   : > { %520 = vmatpush.bf16.msra.mxu0 %v509_v22  ;;  %v512_v25 = vsel %vm507_vm0, %v2423_v19, 0  ;;  %v440_v27 = vld [vmem:[%s437_s21 + $0x8] sm:$0xff]  ;;  %v2415_v29 = vor.u32 %v3064_v23, %v2412_v24  ;;  %v443_v31 = vpack.c.bf16 %v439_v26, %v439_v26  ;;  %v442_v33 = vld [vmem:[%s437_s21 + $0x18] sm:$0xf]  ;;  %v445_v34 = vpack.c.bf16 %v441_v30, %v441_v30  ;;  %v2486_v35 = vld [vmem:[%s4498_s1 + $0x70] sm:$0xf] }
  0x1e   : > { %587 = vmatpush.bf16.msra.mxu2 %v2431_v14  ;;  %538 = vmatpush.bf16.msra.mxu1 %v512_v25  ;;  %v444_v32 = vpack.c.bf16 %v440_v27, %v440_v27  ;;  %v3075_v36 = vld [vmem:[%s4498_s1 + $0x74] sm:$0x30]  ;;  %v446_v37 = vpack.c.bf16 %v442_v33, %v442_v33  ;;  %v3074_v39 = vld [vmem:[%s4498_s1 + $0x74] sm:$0xf]  ;;  %v2488_v40 = vld [vmem:[%s4498_s1 + $0x78] sm:$0x30] }
  0x1f   : > { %605 = vmatpush.bf16.msra.mxu3 %v2435_v18  ;;  %v2487_v38 = vor.u32 %v3075_v36, %v2486_v35  ;;  %v2462_v41 = vld [vmem:[%s4498_s1 + $0x50] sm:$0xf]  ;;  %v460_v42 = vunpack.c.l.b16 %v443_v31  ;;  %v462_v44 = vunpack.c.l.b16 %v445_v34  ;;  %v2491_v45 = vor.u32 %v3074_v39, %v2488_v40  ;;  %v3071_v46 = vld [vmem:[%s4498_s1 + $0x54] sm:$0x30]  ;;  %v3070_v47 = vld [vmem:[%s4498_s1 + $0x54] sm:$0xf] }
  0x20   : > { %v461_v43 = vunpack.c.l.b16 %v444_v32  ;;  %v2464_v48 = vld [vmem:[%s4498_s1 + $0x58] sm:$0x30]  ;;  %v463_v49 = vunpack.c.l.b16 %v446_v37  ;;  %v2463_v51 = vor.u32 %v3071_v46, %v2462_v41  ;;  %v2478_v53 = vld [vmem:[%s4498_s1 + $0x60] sm:$0xf]  ;;  %v3073_v54 = vld [vmem:[%s4498_s1 + $0x64] sm:$0xf0] }
  0x21   : > { %521 = vmatpush.bf16.msra.mxu0 %v2411_v28  ;;  %v735_v50 = vsel %vm507_vm0, %v2487_v38, 0  ;;  %v2467_v52 = vor.u32 %v3070_v47, %v2464_v48  ;;  %v738_v56 = vsel %vm507_vm0, %v2491_v45, 0  ;;  %v2479_v57 = vor.u32 %v3073_v54, %v2478_v53  ;;  %v3072_v58 = vld [vmem:[%s4498_s1 + $0x64] sm:$0xf]  ;;  %v2480_v59 = vld [vmem:[%s4498_s1 + $0x68] sm:$0xf0] }
  0x22   : > { %v3483_v55 = vpack.c.b16 %v461_v43, %v460_v42  ;;  %539 = vmatpush.bf16.msra.mxu1 %v2415_v29  ;;  %746 = vmatpush.bf16.msrb.mxu2 %v735_v50  ;;  %v3492_v60 = vpack.c.b16 %v463_v49, %v462_v44  ;;  %v650_v61 = vsel %vm507_vm0, %v2463_v51, 0  ;;  %v2483_v63 = vor.u32 %v3072_v58, %v2480_v59  ;;  %v2454_v2 = vld [vmem:[%s4498_s1 + $0x40] sm:$0xf]  ;;  %v3069_v4 = vld [vmem:[%s4498_s1 + $0x44] sm:$0xf0]  ;;  %s431_s23 = sand.u32 1, %s3267_s26  }
  0x23   : > { %764 = vmatpush.bf16.msrb.mxu3 %v738_v56  ;;  %v653_v62 = vsel %vm507_vm0, %v2467_v52, 0  ;;  %v3068_v5 = vld [vmem:[%s4498_s1 + $0x44] sm:$0xf]  ;;  %v2455_v7 = vor.u32 %v3069_v4, %v2454_v2  ;;  %v2456_v8 = vld [vmem:[%s4498_s1 + $0x48] sm:$0xf0]  ;;  %v550_v13 = vpack.c.b16 %v462_v44, %v462_v44  ;;  %vm877_vm5 = vcmask 195584  }
  0x24   : > { %2444 = vmatmul.msk.bf16.vlgmr.msra.gmra.mxu2 %vm500_vm1, %v3483_v55  ;;  %2446 = vmatmul.msk.bf16.vlgmr.msra.gmra.mxu3 %vm500_vm1, %v3483_v55  ;;  %v468_v0 = vshrl.u32 %v3483_v55, 16  ;;  %v470_v1 = vshll.u32 %v3483_v55, 16  ;;  %v475_v3 = vshll.u32 %v3492_v60, 16  ;;  %vm466_vm2 = vsmask.f32 7424  ;;  %s432_s15 = scalar_lea.vmem [#allocation2], %s431_s23 }
  0x25   : > { %661 = vmatpush.bf16.msrb.mxu0 %v650_v61  ;;  %v2459_v10 = vor.u32 %v3068_v5, %v2456_v8  ;;  %v479_v14 = vshrl.u32 %v3492_v60, 16  ;;  %vm702_vm3 = vsmask.f32 6400  ;;  %v2510_v20 = vld [vmem:[%s4498_s1 + $0x90] sm:$0xf]  ;;  %v788_v30 = vrot.slane %v3483_v55, 2 }
  0x26   : > { %679 = vmatpush.bf16.msrb.mxu1 %v653_v62  ;;  %v472_v6 = vrot.slane %v470_v1, 1  ;;  %747 = vmatpush.bf16.msrb.mxu2 %v2479_v57  ;;  %v477_v9 = vrot.slane %v475_v3, 1  ;;  %v703_v16 = vrot.slane %v468_v0, 1  ;;  %v704_v17 = vrot.slane %v470_v1, 2  ;;  %v3079_v21 = vld [vmem:[%s4498_s1 + $0x94] sm:$0x30] }
  0x27   : > { %765 = vmatpush.bf16.msrb.mxu3 %v2483_v63  ;;  %v706_v18 = vrot.slane %v479_v14, 1  ;;  %v707_v19 = vrot.slane %v475_v3, 2  ;;  %v3078_v22 = vld [vmem:[%s4498_s1 + $0x94] sm:$0xf]  ;;  %v2511_v24 = vor.u32 %v3079_v21, %v2510_v20  ;;  %v2512_v25 = vld [vmem:[%s4498_s1 + $0x98] sm:$0x30] }
  0x28   : > { %v473_v11 = vor.u32 %v472_v6, %v468_v0  ;;  %v481_v15 = vor.u32 %v479_v14, %v477_v9  ;;  %v705_v23 = vor.u32 %v704_v17, %v703_v16  ;;  %v2502_v26 = vld [vmem:[%s4498_s1 + $0x80] sm:$0xf]  ;;  %v3077_v27 = vld [vmem:[%s4498_s1 + $0x84] sm:$0xf0]  ;;  %v2515_v29 = vor.u32 %v3078_v22, %v2512_v25  ;;  %v3076_v33 = vld [vmem:[%s4498_s1 + $0x84] sm:$0xf] }
  0x29   : > { %662 = vmatpush.bf16.msrb.mxu0 %v2455_v7  ;;  %v708_v28 = vor.u32 %v707_v19, %v706_v18  ;;  %v789_v31 = vrot.slane %v3492_v60, 2  ;;  %v816_v32 = vsel %vm507_vm0, %v2511_v24, 0  ;;  %v2504_v34 = vld [vmem:[%s4498_s1 + $0x88] sm:$0xf0]  ;;  %v2503_v36 = vor.u32 %v3077_v27, %v2502_v26  ;;  %v863_v27 = vld [vmem:[%s4500_s3] sm:$0x3] }
  0x2a   : > { %680 = vmatpush.bf16.msrb.mxu1 %v2459_v10  ;;  %v478_v12 = vsel %vm466_vm2, %v473_v11, %v477_v9  ;;  %v819_v35 = vsel %vm507_vm0, %v2515_v29, 0  ;;  %v2507_v39 = vor.u32 %v3076_v33, %v2504_v34  ;;  %v622_v40 = vrot.slane %v3483_v55, 1  ;;  %s2341_s17 = sshll.u32 %s432_s15, 4  ;;  %s2331_s20 = scalar_lea.sflag [#allocation3], %s431_s23  ;;  %s2342_s17 = int_to_ptr.vmem [resolvable:$true] %s2341_s17 }
  0x2b   : > { %2424 = vmatmul.msk.bf16.vlgmr.msra.gmra.mxu0 %vm500_vm1, %v478_v12  ;;  %2426 = vmatmul.msk.bf16.vlgmr.msra.gmra.mxu1 %vm500_vm1, %v478_v12  ;;  %v790_v37 = vsel %vm507_vm0, %v788_v30, %v789_v31  ;;  %v709_v38 = vsel %vm702_vm3, %v705_v23, %v708_v28  ;;  %v623_v41 = vrot.slane %v3492_v60, 1  ;;  %v865_v34 = vperm.slane %v863_v27, 0  ;;  %s3227_s21 = sshra.s32 %s2344_s16, 4  ;;  %s3233_s27 = scalar_lea.hbm %s4510_s13, 2  ;;  %s3228_s21 = int_to_ptr.hbm [resolvable:$true] %s3227_s21 }
  0x2c   : > { %vm1277_vm6 = vcmask 1043456   ;;  %vm1019_vm7 = vcmask 916480   ;;  %vm1273_vm8 = vcmask 982016   ;;  %vm1818_vm9 = vcmask 64512   ;;  %s3229_s14 = scalar_lea.hbm %s3228_s21, 1  ;;  %p3234_p0 = scmp.lt.s32.totalorder %s3228_s21, %s4510_s13 }
  0x2d   : > { %827 = vmatpush.bf16.msra.mxu0 %v816_v32  ;;  %v624_v42 = vsel %vm621_vm4, %v622_v40, %v623_v41  ;;  %vm1929_vm10 = vcmask 261120   ;;  %vm2290_vm11 = vcmask 1041408   ;;  %vm2094_vm12 = vcmask 654336   ;;  %p3230_p11 = scmp.ne.s32.totalorder %s3228_s21, %s3229_s14  ;;  %p3235_p1 = scmp.lt.s32.totalorder %s3233_s27, %s3229_s14 }
  0x2e   : > { %845 = vmatpush.bf16.msra.mxu1 %v819_v35  ;;  %v866_v35 = vperm.slane %v863_v27, 1  ;;  %v2554_v27 = vld [vmem:[%s4503_s6 + $0x1a0] sm:$0xff]  ;;  %vm2286_vm13 = vcmask 408576   ;;  %vm2315_vm14 = vcmask 73728  }
  0x2f   : > { %p3231_p12 = pnand %p3230_p11, %p3385_p5  ;;  %p3236_p2 = por %p3235_p1, %p3234_p0 }
  0x31   : > { %828 = vmatpush.bf16.msra.mxu0 %v2503_v36  ;;  %p3232_p13 = pneg %p3231_p12 }
  0x32   : > { %846 = vmatpush.bf16.msra.mxu1 %v2507_v39 }
  0x33   : > { %p3237_p3 = pnand %p3236_p2, %p3232_p13 }
  0x34   : > { %2445 = vmatmul.msk.bf16.gmra.mxu2 %vm500_vm1, %v550_v13  ;;  %2447 = vmatmul.msk.bf16.gmra.mxu3 %vm500_vm1, %v550_v13 }
  0x3b   : > { %2425 = vmatmul.msk.bf16.gmra.mxu0 %vm500_vm1, %v481_v15  ;;  %2427 = vmatmul.msk.bf16.gmra.mxu1 %vm500_vm1, %v481_v15 }
  0x44   : > { %2492 = vmatmul.msk.bf16.vlgmr.msrb.gmra.mxu2 %vm500_vm1, %v709_v38  ;;  %2494 = vmatmul.msk.bf16.vlgmr.msrb.gmra.mxu3 %vm500_vm1, %v709_v38 }
  0x4b   : > { %2468 = vmatmul.msk.bf16.vlgmr.msrb.gmra.mxu0 %vm500_vm1, %v624_v42  ;;  %2470 = vmatmul.msk.bf16.vlgmr.msrb.gmra.mxu1 %vm500_vm1, %v624_v42  ;;  %v1004_v42 = vld [vmem:[%s4503_s6 + $0x78] sm:$0xff] }
  0x4c   : > { %1026 = vmatpush.msrb.mxu0 %v1004_v42  ;;  %v2534_v42 = vld [vmem:[%s4503_s6 + $0x100] sm:$0xff] }
  0x54   : > { %2493 = vmatmul.msk.bf16.gmra.mxu2 %vm500_vm1, %v708_v28  ;;  %2495 = vmatmul.msk.bf16.gmra.mxu3 %vm500_vm1, %v708_v28 }
  0x5b   : > { %2469 = vmatmul.msk.bf16.gmra.mxu0 %vm500_vm1, %v623_v41  ;;  %2471 = vmatmul.msk.bf16.gmra.mxu1 %vm500_vm1, %v623_v41 }
  0x6b   : > { %2516 = vmatmul.msk.bf16.vlgmr.msra.gmra.mxu0 %vm500_vm1, %v790_v37  ;;  %2518 = vmatmul.msk.bf16.vlgmr.msra.gmra.mxu1 %vm500_vm1, %v790_v37 }
  0x7b   : > { %2517 = vmatmul.msk.bf16.gmra.mxu0 %vm500_vm1, %v789_v31  ;;  %2519 = vmatmul.msk.bf16.gmra.mxu1 %vm500_vm1, %v789_v31 }
  0xa7   : > { %v589_v43 = vpop.f32.mrf.mxu2  ;;  %v607_v44 = vpop.f32.mrf.mxu3 }
  0xa8   : > { %v523_v45 = vpop.f32.mrf.mxu0  ;;  %v541_v46 = vpop.f32.mrf.mxu1 }
  0xa9   : > { %v590_v47 = vadd.f32 %v589_v43, %v523_v45  ;;  %v608_v48 = vadd.f32 %v607_v44, %v541_v46 }
  0xaf   : > { %v591_v49 = vpop.f32.mrf.mxu2  ;;  %v609_v50 = vpop.f32.mrf.mxu3 }
  0xb0   : > { %v525_v51 = vpop.f32.mrf.mxu0  ;;  %v543_v52 = vpop.f32.mrf.mxu1 }
  0xb1   : > { %v592_v53 = vadd.f32 %v591_v49, %v525_v51  ;;  %v610_v54 = vadd.f32 %v609_v50, %v543_v52  ;;  %v1002_v51 = vld [vmem:[%s4503_s6 + $0x68] sm:$0xff]  ;;  %v1017_v52 = vld [vmem:[%s4503_s6 + $0xe0] sm:$0xff] }
  0xb7   : > { %v594_v55 = vpop.f32.mrf.mxu2  ;;  %v612_v56 = vpop.f32.mrf.mxu3 }
  0xb8   : > { %v528_v57 = vpop.f32.mrf.mxu0  ;;  %v546_v58 = vpop.f32.mrf.mxu1 }
  0xb9   : > { %v595_v19 = vadd.f32 %v594_v55, %v528_v57  ;;  %v613_v20 = vadd.f32 %v612_v56, %v546_v58  ;;  %v875_v56 = vld [vmem:[%s4502_s5] sm:$0xff] }
  0xbf   : > { %v596_v59 = vpop.f32.mrf.mxu2  ;;  %v614_v60 = vpop.f32.mrf.mxu3 }
  0xc0   : > { %v530_v61 = vpop.f32.mrf.mxu0  ;;  %v548_v62 = vpop.f32.mrf.mxu1  ;;  %v1001_v59 = vld [vmem:[%s4503_s6 + $0x60] sm:$0xff]  ;;  %v1015_v60 = vld [vmem:[%s4503_s6 + $0xd0] sm:$0xff] }
  0xc1   : > { %v1000_v61 = vld [vmem:[%s4503_s6 + $0x58] sm:$0xff]  ;;  %v2547_v62 = vld [vmem:[%s4503_s6 + $0x168] sm:$0xff] }
  0xc7   : > { %v749_v63 = vpop.f32.mrf.mxu2  ;;  %v767_v0 = vpop.f32.mrf.mxu3 }
  0xc8   : > { %v664_v1 = vpop.f32.mrf.mxu0  ;;  %v682_v2 = vpop.f32.mrf.mxu1 }
  0xc9   : > { %v691_v25 = vadd.f32 %v664_v1, %v590_v47  ;;  %v692_v26 = vadd.f32 %v682_v2, %v608_v48  ;;  %v1003_v47 = vld [vmem:[%s4503_s6 + $0x70] sm:$0xff]  ;;  %v1018_v48 = vld [vmem:[%s4503_s6 + $0xe8] sm:$0xff]  ;;  %v2546_v2 = vld [vmem:[%s4503_s6 + $0x160] sm:$0xff] }
  0xca   : > { %1051 = vmatpush.msrb.mxu1 %v1018_v48  ;;  %1027 = vmatpush.msrb.mxu0 %v1003_v47  ;;  %v876_v1 = vld [vmem:[%s4502_s5 + $0x8] sm:$0xf]  ;;  %v2549_v47 = vld [vmem:[%s4503_s6 + $0x178] sm:$0xff]  ;;  %v989_v48 = vld [vmem:[%s4503_s6] sm:$0xff] }
  0xcb   : > { %v776_v32 = vadd.f32 %v749_v63, %v691_v25  ;;  %v777_v33 = vadd.f32 %v767_v0, %v692_v26  ;;  %v2561_v63 = vld [vmem:[%s4503_s6 + $0x1d8] sm:$0xff]  ;;  %v999_v0 = vld [vmem:[%s4503_s6 + $0x50] sm:$0xff]  ;;  %v2538_v26 = vld [vmem:[%s4503_s6 + $0x120] sm:$0xff] }
  0xcc   : > { %1052 = vmatpush.msrb.mxu1 %v1017_v52  ;;  %1028 = vmatpush.msrb.mxu0 %v1002_v51  ;;  %v1011_v25 = vld [vmem:[%s4503_s6 + $0xb0] sm:$0xff] }
  0xcd   : > { %v2548_v51 = vld [vmem:[%s4503_s6 + $0x170] sm:$0xff] }
  0xce   : > { %1029 = vmatpush.msrb.mxu0 %v1001_v59  ;;  %v1169_v52 = vld [vmem:[%s4499_s2 + $0x70] sm:$0xff]  ;;  %v3093_v59 = vld [vmem:[%s4499_s2 + $0x64] sm:$0xf0] }
  0xcf   : > { %v751_v3 = vpop.f32.mrf.mxu2  ;;  %v769_v4 = vpop.f32.mrf.mxu3 }
  0xd0   : > { %v666_v5 = vpop.f32.mrf.mxu0  ;;  %v684_v6 = vpop.f32.mrf.mxu1  ;;  %1030 = vmatpush.msrb.mxu0 %v1000_v61 }
  0xd1   : > { %v693_v21 = vadd.f32 %v666_v5, %v592_v53  ;;  %v694_v22 = vadd.f32 %v684_v6, %v610_v54  ;;  %v1016_v53 = vld [vmem:[%s4503_s6 + $0xd8] sm:$0xff]  ;;  %v2559_v5 = vld [vmem:[%s4503_s6 + $0x1c8] sm:$0xff]  ;;  %v2544_v6 = vld [vmem:[%s4503_s6 + $0x150] sm:$0xff] }
  0xd2   : > { %1053 = vmatpush.msrb.mxu1 %v1016_v53  ;;  %1031 = vmatpush.msrb.mxu0 %v999_v0  ;;  %v2578_v53 = vld [vmem:[%s4499_s2 + $0xe8] sm:$0xff]  ;;  %v3092_v0 = vld [vmem:[%s4499_s2 + $0x64] sm:$0xf] }
  0xd3   : > { %v778_v28 = vadd.f32 %v751_v3, %v693_v21  ;;  %v779_v29 = vadd.f32 %v769_v4, %v694_v22  ;;  %v2560_v3 = vld [vmem:[%s4503_s6 + $0x1d0] sm:$0xff]  ;;  %v2545_v4 = vld [vmem:[%s4503_s6 + $0x158] sm:$0xff]  ;;  %v2539_v22 = vld [vmem:[%s4503_s6 + $0x128] sm:$0xff] }
  0xd4   : > { %1054 = vmatpush.msrb.mxu1 %v1015_v60  ;;  %v1012_v21 = vld [vmem:[%s4503_s6 + $0xb8] sm:$0xff] }
  0xd7   : > { %v754_v7 = vpop.f32.mrf.mxu2  ;;  %v772_v8 = vpop.f32.mrf.mxu3 }
  0xd8   : > { %v669_v9 = vpop.f32.mrf.mxu0  ;;  %v687_v10 = vpop.f32.mrf.mxu1 }
  0xd9   : > { %v695_v23 = vadd.f32 %v669_v9, %v595_v19  ;;  %v696_v24 = vadd.f32 %v687_v10, %v613_v20  ;;  %v2524_v9 = vld [vmem:[%s4502_s5 + $0x10] sm:$0xff]  ;;  %v2542_v10 = vld [vmem:[%s4503_s6 + $0x140] sm:$0xff]  ;;  %v996_v20 = vld [vmem:[%s4503_s6 + $0x38] sm:$0xff] }
  0xda   : > { %v2556_v19 = vld [vmem:[%s4503_s6 + $0x1b0] sm:$0xff] }
  0xdb   : > { %v780_v30 = vadd.f32 %v754_v7, %v695_v23  ;;  %v781_v31 = vadd.f32 %v772_v8, %v696_v24  ;;  %v2558_v7 = vld [vmem:[%s4503_s6 + $0x1c0] sm:$0xff]  ;;  %v2543_v8 = vld [vmem:[%s4503_s6 + $0x148] sm:$0xff]  ;;  %v995_v24 = vld [vmem:[%s4503_s6 + $0x30] sm:$0xff] }
  0xdc   : > { %v2555_v23 = vld [vmem:[%s4503_s6 + $0x1a8] sm:$0xff] }
  0xdf   : > { %v756_v11 = vpop.f32.mrf.mxu2  ;;  %v774_v12 = vpop.f32.mrf.mxu3 }
  0xe0   : > { %v671_v13 = vpop.f32.mrf.mxu0  ;;  %v689_v14 = vpop.f32.mrf.mxu1  ;;  %v2525_v11 = vld [vmem:[%s4502_s5 + $0x18] sm:$0xf]  ;;  %v998_v12 = vld [vmem:[%s4503_s6 + $0x48] sm:$0xff] }
  0xe1   : > { %v1014_v13 = vld [vmem:[%s4503_s6 + $0xc8] sm:$0xff]  ;;  %v2541_v14 = vld [vmem:[%s4503_s6 + $0x138] sm:$0xff]  ;;  %1032 = vmatpush.msrb.mxu0 %v998_v12 }
  0xe2   : > { %1055 = vmatpush.msrb.mxu1 %v1014_v13 }
  0xe8   : > { %v830_v15 = vpop.f32.mrf.mxu0  ;;  %v848_v16 = vpop.f32.mrf.mxu1 }
  0xe9   : > { %v857_v43 = vadd.f32 %v830_v15, %v776_v32  ;;  %v858_v44 = vadd.f32 %v848_v16, %v777_v33  ;;  %v2557_v15 = vld [vmem:[%s4503_s6 + $0x1b8] sm:$0xff]  ;;  %v997_v16 = vld [vmem:[%s4503_s6 + $0x40] sm:$0xff] }
  0xea   : > { %1033 = vmatpush.msrb.mxu0 %v997_v16  ;;  %v993_v32 = vld [vmem:[%s4503_s6 + $0x20] sm:$0xff] }
  0xeb   : > { %v869_v54 = vadd.f32 %v865_v34, %v857_v43  ;;  %v870_v55 = vadd.f32 %v866_v35, %v858_v44  ;;  %v1009_v33 = vld [vmem:[%s4503_s6 + $0xa0] sm:$0xff]  ;;  %v990_v44 = vld [vmem:[%s4503_s6 + $0x8] sm:$0xff] }
  0xec   : > { %1034 = vmatpush.msrb.mxu0 %v996_v20  ;;  %v2550_v43 = vld [vmem:[%s4503_s6 + $0x180] sm:$0xff]  ;;  %v2621_v20 = vld [vmem:[%s4499_s2 + $0xc8] sm:$0xf] }
  0xee   : > { %1035 = vmatpush.msrb.mxu0 %v995_v24 }
  0xf0   : > { %v832_v17 = vpop.f32.mrf.mxu0  ;;  %v850_v18 = vpop.f32.mrf.mxu1 }
  0xf1   : > { %v859_v38 = vadd.f32 %v832_v17, %v778_v28  ;;  %v860_v39 = vadd.f32 %v850_v18, %v779_v29  ;;  %v1013_v17 = vld [vmem:[%s4503_s6 + $0xc0] sm:$0xff]  ;;  %v2540_v18 = vld [vmem:[%s4503_s6 + $0x130] sm:$0xff]  ;;  %v994_v28 = vld [vmem:[%s4503_s6 + $0x28] sm:$0xff] }
  0xf2   : > { %1056 = vmatpush.msrb.mxu1 %v1013_v17  ;;  %v1010_v29 = vld [vmem:[%s4503_s6 + $0xa8] sm:$0xff]  ;;  %1036 = vmatpush.msrb.mxu0 %v994_v28 }
  0xf3   : > { %v871_v49 = vadd.f32 %v865_v34, %v859_v38  ;;  %v872_v50 = vadd.f32 %v866_v35, %v860_v39  ;;  %v2535_v38 = vld [vmem:[%s4503_s6 + $0x108] sm:$0xff] }
  0xf4   : > { %1057 = vmatpush.msrb.mxu1 %v1012_v21  ;;  %1037 = vmatpush.msrb.mxu0 %v993_v32  ;;  %v2551_v39 = vld [vmem:[%s4503_s6 + $0x188] sm:$0xff]  ;;  %v3105_v21 = vld [vmem:[%s4499_s2 + $0xcc] sm:$0xf0]  ;;  %v2613_v32 = vld [vmem:[%s4499_s2 + $0xb8] sm:$0xf] }
  0xf5   : > { %v2622_v28 = vor.u32 %v3105_v21, %v2621_v20 }
  0xf6   : > { %1058 = vmatpush.msrb.mxu1 %v1011_v25 }
  0xf8   : > { %v835_v36 = vpop.f32.mrf.mxu0  ;;  %v853_v37 = vpop.f32.mrf.mxu1  ;;  %1059 = vmatpush.msrb.mxu1 %v1010_v29 }
  0xf9   : > { %v861_v40 = vadd.f32 %v835_v36, %v780_v30  ;;  %v862_v41 = vadd.f32 %v853_v37, %v781_v31  ;;  %v2537_v30 = vld [vmem:[%s4503_s6 + $0x118] sm:$0xff] }
  0xfa   : > { %v2553_v31 = vld [vmem:[%s4503_s6 + $0x198] sm:$0xff]  ;;  %1060 = vmatpush.msrb.mxu1 %v1009_v33 }
  0xfb   : > { %v873_v45 = vadd.f32 %v865_v34, %v861_v40  ;;  %v874_v46 = vadd.f32 %v866_v35, %v862_v41  ;;  %v2536_v34 = vld [vmem:[%s4503_s6 + $0x110] sm:$0xff]  ;;  %v992_v36 = vld [vmem:[%s4503_s6 + $0x18] sm:$0xff] }
  0xfc   : > { %v2552_v35 = vld [vmem:[%s4503_s6 + $0x190] sm:$0xff]  ;;  %v1008_v37 = vld [vmem:[%s4503_s6 + $0x98] sm:$0xff]  ;;  %1038 = vmatpush.msrb.mxu0 %v992_v36 }
  0xfd   : > { %897 = vmatpush.msra.mxu2 %v873_v45  ;;  %920 = vmatpush.msra.mxu3 %v874_v46  ;;  %v991_v40 = vld [vmem:[%s4503_s6 + $0x10] sm:$0xff]  ;;  %v3102_v36 = vld [vmem:[%s4499_s2 + $0xbc] sm:$0xf] }
  0xfe   : > { %v1007_v41 = vld [vmem:[%s4503_s6 + $0x90] sm:$0xff]  ;;  %1061 = vmatpush.msrb.mxu1 %v1008_v37  ;;  %1039 = vmatpush.msrb.mxu0 %v991_v40  ;;  %v2615_v37 = vld [vmem:[%s4499_s2 + $0xc0] sm:$0xf0] }
  0xff   : > { %898 = vmatpush.msra.mxu2 %v871_v49  ;;  %921 = vmatpush.msra.mxu3 %v872_v50  ;;  %v2663_v40 = vld [vmem:[%s4499_s2 + $0x30] sm:$0xf] }
 0x100   : > { %v837_v57 = vpop.f32.mrf.mxu0  ;;  %v855_v58 = vpop.f32.mrf.mxu1  ;;  %1062 = vmatpush.msrb.mxu1 %v1007_v41  ;;  %1040 = vmatpush.msrb.mxu0 %v990_v44  ;;  %v3086_v44 = vld [vmem:[%s4499_s2 + $0x34] sm:$0xf] }
 0x101   : > { %899 = vmatpush.msra.mxu2 %v869_v54  ;;  %922 = vmatpush.msra.mxu3 %v870_v55  ;;  %v1242_v57 = vunpack.c.h.b16 %v2578_v53  ;;  %v2687_v58 = vld [vmem:[%s4499_s2 + $0x60] sm:$0xf] }
 0x102   : > { %2520 = vmatmul.msk.f32.vlgmr.msra.gmra.mxu2 %vm877_vm5, %v875_v56  ;;  %2522 = vmatmul.msk.f32.vlgmr.msra.gmra.mxu3 %vm877_vm5, %v875_v56  ;;  %v1241_v56 = vunpack.c.l.b16 %v2578_v53  ;;  %v2688_v12 = vor.u32 %v3093_v59, %v2687_v58  ;;  %v3085_v53 = vld [vmem:[%s4499_s2 + $0x24] sm:$0xf0] }
 0x103   : > { %952 = vmatpush.msrb.mxu2 %v873_v45  ;;  %975 = vmatpush.msrb.mxu3 %v874_v46  ;;  %v1006_v45 = vld [vmem:[%s4503_s6 + $0x88] sm:$0xff]  ;;  %v2533_v46 = vld [vmem:[%s4503_s6 + $0xf8] sm:$0xff] }
 0x104   : > { %1063 = vmatpush.msrb.mxu1 %v1006_v45  ;;  %1041 = vmatpush.msrb.mxu0 %v989_v48  ;;  %v2665_v45 = vld [vmem:[%s4499_s2 + $0x38] sm:$0xf0] }
 0x105   : > { %953 = vmatpush.msrb.mxu2 %v871_v49  ;;  %976 = vmatpush.msrb.mxu3 %v872_v50  ;;  %v1005_v49 = vld [vmem:[%s4503_s6 + $0x80] sm:$0xff]  ;;  %v2532_v50 = vld [vmem:[%s4503_s6 + $0xf0] sm:$0xff] }
 0x106   : > { %1064 = vmatpush.msrb.mxu1 %v1005_v49  ;;  %v2668_v49 = vor.u32 %v3086_v44, %v2665_v45 }
 0x107   : > { %954 = vmatpush.msrb.mxu2 %v869_v54  ;;  %977 = vmatpush.msrb.mxu3 %v870_v55  ;;  %v1353_v54 = vunpack.c.l.b16 %v1169_v52  ;;  %v1354_v55 = vunpack.c.h.b16 %v1169_v52  ;;  %v2655_v52 = vld [vmem:[%s4499_s2 + $0x20] sm:$0xf] }
 0x109   : > { %1103 = vmatpush.msra.mxu2 %v2547_v62  ;;  %1128 = vmatpush.msra.mxu3 %v2561_v63  ;;  %v1369_v60 = vpack.c.b16 %v1353_v54, %v1353_v54  ;;  %v1370_v61 = vpack.c.b16 %v1354_v55, %v1354_v55  ;;  %v1257_v62 = vpack.c.b16 %v1241_v56, %v1241_v56  ;;  %v3084_v54 = vld [vmem:[%s4499_s2 + $0x24] sm:$0xf]  ;;  %v2657_v55 = vld [vmem:[%s4499_s2 + $0x28] sm:$0xf0] }
 0x10a   : > { %2521 = vmatmul.msk.f32.gmra.mxu2 %vm877_vm5, %v876_v1  ;;  %2523 = vmatmul.msk.f32.gmra.mxu3 %vm877_vm5, %v876_v1  ;;  %v1258_v63 = vpack.c.b16 %v1242_v57, %v1242_v57  ;;  %v2689_v1 = vld [vmem:[%s4499_s2 + $0x68] sm:$0xf0] }
 0x10b   : > { %1104 = vmatpush.msra.mxu2 %v2546_v2  ;;  %1129 = vmatpush.msra.mxu3 %v2560_v3  ;;  %v2629_v2 = vld [vmem:[%s4499_s2 + $0xd8] sm:$0xf]  ;;  %v2692_v13 = vor.u32 %v3092_v0, %v2689_v1  ;;  %v2656_v0 = vor.u32 %v3085_v53, %v2655_v52  ;;  %v2660_v1 = vor.u32 %v3084_v54, %v2657_v55  ;;  %v2835_v52 = vld [vmem:[%s4499_s2 + $0x1d0] sm:$0xf0]  ;;  %v2760_v54 = vld [vmem:[%s4499_s2 + $0x150] sm:$0xf] }
 0x10c   : > { %v3121_v55 = vld [vmem:[%s4499_s2 + $0x154] sm:$0xf0] }
 0x10d   : > { %1105 = vmatpush.msra.mxu2 %v2545_v4  ;;  %1130 = vmatpush.msra.mxu3 %v2559_v5  ;;  %v3107_v5 = vld [vmem:[%s4499_s2 + $0xdc] sm:$0xf0] }
 0x10e   : > { %v2630_v16 = vor.u32 %v3107_v5, %v2629_v2  ;;  %v3098_v2 = vld [vmem:[%s4499_s2 + $0x9c] sm:$0xf]  ;;  %v3083_v5 = vld [vmem:[%s4499_s2 + $0x14] sm:$0xf0] }
 0x10f   : > { %1106 = vmatpush.msra.mxu2 %v2544_v6  ;;  %1131 = vmatpush.msra.mxu3 %v2558_v7  ;;  %v3106_v6 = vld [vmem:[%s4499_s2 + $0xdc] sm:$0xf]  ;;  %v2631_v7 = vld [vmem:[%s4499_s2 + $0xe0] sm:$0xf0] }
 0x110   : > { %v2634_v17 = vor.u32 %v3106_v6, %v2631_v7  ;;  %v3082_v6 = vld [vmem:[%s4499_s2 + $0x14] sm:$0xf]  ;;  %v2649_v7 = vld [vmem:[%s4499_s2 + $0x18] sm:$0xf0] }
 0x111   : > { %1107 = vmatpush.msra.mxu2 %v2543_v8  ;;  %1132 = vmatpush.msra.mxu3 %v2557_v15  ;;  %v1389_v8 = vsel %vm1277_vm6, %v1369_v60, 0  ;;  %v3091_v15 = vld [vmem:[%s4499_s2 + $0x54] sm:$0xf0] }
 0x112   : > { %2526 = vmatmul.msk.f32.vlgmr.msrb.gmra.mxu2 %vm877_vm5, %v2524_v9  ;;  %2528 = vmatmul.msk.f32.vlgmr.msrb.gmra.mxu3 %vm877_vm5, %v2524_v9  ;;  %v1392_v9 = vsel %vm1277_vm6, %v1370_v61, 0 }
 0x113   : > { %1108 = vmatpush.msra.mxu2 %v2542_v10  ;;  %1133 = vmatpush.msra.mxu3 %v2556_v19  ;;  %v1279_v10 = vsel %vm1277_vm6, %v1257_v62, 0  ;;  %v2681_v19 = vld [vmem:[%s4499_s2 + $0x58] sm:$0xf0]  ;;  %v2597_v62 = vld [vmem:[%s4499_s2 + $0x98] sm:$0xf] }
 0x114   : > { %1284 = vmatpush.bf16.msra.mxu0 %v1279_v10 }
 0x115   : > { %1109 = vmatpush.msra.mxu2 %v2541_v14  ;;  %1134 = vmatpush.msra.mxu3 %v2555_v23  ;;  %v2679_v14 = vld [vmem:[%s4499_s2 + $0x50] sm:$0xf]  ;;  %v2623_v23 = vld [vmem:[%s4499_s2 + $0xd0] sm:$0xf0] }
 0x116   : > { %v2680_v24 = vor.u32 %v3091_v15, %v2679_v14 }
 0x117   : > { %1110 = vmatpush.msra.mxu2 %v2540_v18  ;;  %1135 = vmatpush.msra.mxu3 %v2554_v27  ;;  %v3090_v18 = vld [vmem:[%s4499_s2 + $0x54] sm:$0xf]  ;;  %v3089_v27 = vld [vmem:[%s4499_s2 + $0x44] sm:$0xf0] }
 0x118   : > { %v2684_v25 = vor.u32 %v3090_v18, %v2681_v19  ;;  %1285 = vmatpush.bf16.msra.mxu0 %v2630_v16  ;;  %v2782_v16 = vld [vmem:[%s4499_s2 + $0x1d8] sm:$0xff]  ;;  %v3097_v18 = vld [vmem:[%s4499_s2 + $0x8c] sm:$0xf0]  ;;  %v3096_v19 = vld [vmem:[%s4499_s2 + $0x8c] sm:$0xf] }
 0x119   : > { %1111 = vmatpush.msra.mxu2 %v2539_v22  ;;  %1136 = vmatpush.msra.mxu3 %v2553_v31  ;;  %v3104_v22 = vld [vmem:[%s4499_s2 + $0xcc] sm:$0xf]  ;;  %v1611_v20 = vunpack.c.l.b16 %v2782_v16  ;;  %v1612_v21 = vunpack.c.h.b16 %v2782_v16 }
 0x11a   : > { %2527 = vmatmul.msk.f32.gmra.mxu2 %vm877_vm5, %v2525_v11  ;;  %2529 = vmatmul.msk.f32.gmra.mxu3 %vm877_vm5, %v2525_v11  ;;  %v1282_v11 = vsel %vm1277_vm6, %v1258_v63, 0  ;;  %v2626_v29 = vor.u32 %v3104_v22, %v2623_v23  ;;  %v2673_v31 = vld [vmem:[%s4499_s2 + $0x48] sm:$0xf0]  ;;  %v3099_v63 = vld [vmem:[%s4499_s2 + $0x9c] sm:$0xf0] }
 0x11b   : > { %1112 = vmatpush.msra.mxu2 %v2538_v26  ;;  %1137 = vmatpush.msra.mxu3 %v2552_v35  ;;  %v2671_v26 = vld [vmem:[%s4499_s2 + $0x40] sm:$0xf]  ;;  %v2591_v23 = vld [vmem:[%s4499_s2 + $0x90] sm:$0xf0] }
 0x11c   : > { %1297 = vmatpush.bf16.msra.mxu1 %v1282_v11  ;;  %v3103_v35 = vld [vmem:[%s4499_s2 + $0xbc] sm:$0xf0]  ;;  %1286 = vmatpush.bf16.msra.mxu0 %v2622_v28  ;;  %v2652_v11 = vor.u32 %v3082_v6, %v2649_v7  ;;  %v3080_v28 = vld [vmem:[%s4499_s2 + $0x4] sm:$0xf]  ;;  %v2754_v6 = vld [vmem:[%s4499_s2 + $0x148] sm:$0xf0] }
 0x11d   : > { %1113 = vmatpush.msra.mxu2 %v2537_v30  ;;  %1138 = vmatpush.msra.mxu3 %v2551_v39  ;;  %v3088_v30 = vld [vmem:[%s4499_s2 + $0x44] sm:$0xf]  ;;  %v2614_v41 = vor.u32 %v3103_v35, %v2613_v32  ;;  %v3095_v35 = vld [vmem:[%s4499_s2 + $0x7c] sm:$0xf0]  ;;  %v2817_v7 = vld [vmem:[%s4499_s2 + $0x1a8] sm:$0xf] }
 0x11e   : > { %v2676_v39 = vor.u32 %v3088_v30, %v2673_v31  ;;  %v1627_v30 = vpack.c.b16 %v1611_v20, %v1611_v20  ;;  %v1628_v31 = vpack.c.b16 %v1612_v21, %v1612_v21  ;;  %v2709_v32 = vld [vmem:[%s4499_s2 + $0x160] sm:$0xff] }
 0x11f   : > { %1114 = vmatpush.msra.mxu2 %v2536_v34  ;;  %1139 = vmatpush.msra.mxu3 %v2550_v43  ;;  %v3087_v43 = vld [vmem:[%s4499_s2 + $0x34] sm:$0xf0]  ;;  %v3129_v21 = vld [vmem:[%s4499_s2 + $0x19c] sm:$0xf0] }
 0x120   : > { %1298 = vmatpush.bf16.msra.mxu1 %v2634_v17  ;;  %v2664_v48 = vor.u32 %v3087_v43, %v2663_v40  ;;  %1287 = vmatpush.bf16.msra.mxu0 %v2614_v41  ;;  %v2589_v17 = vld [vmem:[%s4499_s2 + $0x88] sm:$0xf]  ;;  %v1650_v40 = vsel %vm1277_vm6, %v1628_v31, 0 }
 0x121   : > { %1115 = vmatpush.msra.mxu2 %v2535_v38  ;;  %1140 = vmatpush.msra.mxu3 %v2549_v47  ;;  %v2672_v38 = vor.u32 %v3089_v27, %v2671_v26  ;;  %v3101_v47 = vld [vmem:[%s4499_s2 + $0xac] sm:$0xf0]  ;;  %v2590_v22 = vor.u32 %v3097_v18, %v2589_v17  ;;  %v2594_v26 = vor.u32 %v3096_v19, %v2591_v23  ;;  %v3116_v17 = vld [vmem:[%s4499_s2 + $0x134] sm:$0xf]  ;;  %v2746_v18 = vld [vmem:[%s4499_s2 + $0x138] sm:$0xf0] }
 0x122   : > { %v2809_v19 = vld [vmem:[%s4499_s2 + $0x198] sm:$0xf]  ;;  %v2749_v20 = vor.u32 %v3116_v17, %v2746_v18  ;;  %v2811_v23 = vld [vmem:[%s4499_s2 + $0x1a0] sm:$0xf0]  ;;  %v2801_v31 = vld [vmem:[%s4499_s2 + $0x188] sm:$0xf] }
 0x123   : > { %1116 = vmatpush.msra.mxu2 %v2534_v42  ;;  %1141 = vmatpush.msra.mxu3 %v2548_v51  ;;  %v2618_v42 = vor.u32 %v3102_v36, %v2615_v37  ;;  %v2607_v51 = vld [vmem:[%s4499_s2 + $0xb0] sm:$0xf0]  ;;  %v3094_v36 = vld [vmem:[%s4499_s2 + $0x7c] sm:$0xf]  ;;  %v1480_v37 = vunpack.c.l.b16 %v2709_v32 }
 0x124   : > { %1299 = vmatpush.bf16.msra.mxu1 %v2626_v29  ;;  %v2641_v29 = vld [vmem:[%s4499_s2 + $0x8] sm:$0xf0] }
 0x125   : > { %1117 = vmatpush.msra.mxu2 %v2533_v46  ;;  %1394 = vmatpush.bf16.msrb.mxu3 %v1389_v8  ;;  %v2605_v46 = vld [vmem:[%s4499_s2 + $0xa8] sm:$0xf]  ;;  %v2598_v8 = vor.u32 %v3099_v63, %v2597_v62  ;;  %v1496_v44 = vpack.c.b16 %v1480_v37, %v1480_v37  ;;  %v3132_v63 = vld [vmem:[%s4499_s2 + $0x1bc] sm:$0xf] }
 0x126   : > { %v2606_v60 = vor.u32 %v3101_v47, %v2605_v46  ;;  %v2833_v46 = vld [vmem:[%s4499_s2 + $0x1c8] sm:$0xf]  ;;  %v3135_v47 = vld [vmem:[%s4499_s2 + $0x1cc] sm:$0xf0] }
 0x127   : > { %1118 = vmatpush.msra.mxu2 %v2532_v50  ;;  %v3100_v50 = vld [vmem:[%s4499_s2 + $0xac] sm:$0xf] }
 0x128   : > { %1300 = vmatpush.bf16.msra.mxu1 %v2618_v42  ;;  %v2610_v61 = vor.u32 %v3100_v50, %v2607_v51  ;;  %1288 = vmatpush.bf16.msra.mxu0 %v2606_v60  ;;  %v2583_v42 = vld [vmem:[%s4499_s2 + $0x80] sm:$0xf0]  ;;  %v2834_v51 = vor.u32 %v3135_v47, %v2833_v46  ;;  %v3133_v60 = vld [vmem:[%s4499_s2 + $0x1bc] sm:$0xf0]  ;;  %v3124_v47 = vld [vmem:[%s4499_s2 + $0x17c] sm:$0xf] }
 0x129   : > { %1407 = vmatpush.bf16.msrb.mxu2 %v1392_v9  ;;  %1395 = vmatpush.bf16.msrb.mxu3 %v2688_v12  ;;  %v2586_v43 = vor.u32 %v3094_v36, %v2583_v42  ;;  %v2803_v36 = vld [vmem:[%s4499_s2 + $0x190] sm:$0xf0]  ;;  %v2730_v42 = vld [vmem:[%s4499_s2 + $0x118] sm:$0xf0] }
 0x12c   : > { %1301 = vmatpush.bf16.msra.mxu1 %v2610_v61  ;;  %1289 = vmatpush.bf16.msra.mxu0 %v2598_v8  ;;  %v3131_v8 = vld [vmem:[%s4499_s2 + $0x1ac] sm:$0xf0] }
 0x12d   : > { %1408 = vmatpush.bf16.msrb.mxu2 %v2692_v13  ;;  %1396 = vmatpush.bf16.msrb.mxu3 %v2680_v24  ;;  %v2639_v24 = vld [vmem:[%s4499_s2] sm:$0xf] }
 0x130   : > { %1290 = vmatpush.bf16.msra.mxu0 %v2590_v22  ;;  %v3128_v22 = vld [vmem:[%s4499_s2 + $0x19c] sm:$0xf] }
 0x131   : > { %1409 = vmatpush.bf16.msrb.mxu2 %v2684_v25  ;;  %1397 = vmatpush.bf16.msrb.mxu3 %v2672_v38  ;;  %v3081_v25 = vld [vmem:[%s4499_s2 + $0x4] sm:$0xf0]  ;;  %v1481_v38 = vunpack.c.h.b16 %v2709_v32  ;;  %v3127_v32 = vld [vmem:[%s4499_s2 + $0x18c] sm:$0xf0] }
 0x132   : > { %v2640_v27 = vor.u32 %v3081_v25, %v2639_v24  ;;  %v2810_v24 = vor.u32 %v3129_v21, %v2809_v19  ;;  %v2814_v25 = vor.u32 %v3128_v22, %v2811_v23  ;;  %v2855_v21 = vld [vmem:[%s4499_s2 + $0x250] sm:$0xff] }
 0x133   : > { %v1497_v45 = vpack.c.b16 %v1481_v38, %v1481_v38  ;;  %v2728_v38 = vld [vmem:[%s4499_s2 + $0x110] sm:$0xf] }
 0x135   : > { %1410 = vmatpush.bf16.msrb.mxu2 %v2676_v39  ;;  %1398 = vmatpush.bf16.msrb.mxu3 %v2664_v48  ;;  %v1647_v39 = vsel %vm1277_vm6, %v1627_v30, 0  ;;  %v3134_v48 = vld [vmem:[%s4499_s2 + $0x1cc] sm:$0xf]  ;;  %v1519_v50 = vsel %vm1277_vm6, %v1497_v45, 0 }
 0x136   : > { %v2838_v53 = vor.u32 %v3134_v48, %v2835_v52  ;;  %v2738_v30 = vld [vmem:[%s4499_s2 + $0x128] sm:$0xf0]  ;;  %v2795_v48 = vld [vmem:[%s4499_s2 + $0x180] sm:$0xf0] }
 0x137   : > { %v3110_v52 = vld [vmem:[%s4499_s2 + $0x104] sm:$0xf] }
 0x139   : > { %1411 = vmatpush.bf16.msrb.mxu2 %v2668_v49  ;;  %1399 = vmatpush.bf16.msrb.mxu3 %v2656_v0  ;;  %v1516_v49 = vsel %vm1277_vm6, %v1496_v44, 0  ;;  %v2827_v0 = vld [vmem:[%s4499_s2 + $0x1c0] sm:$0xf0]  ;;  %v3125_v44 = vld [vmem:[%s4499_s2 + $0x17c] sm:$0xf0] }
 0x13d   : > { %1412 = vmatpush.bf16.msrb.mxu2 %v2660_v1  ;;  %v2830_v1 = vor.u32 %v3132_v63, %v2827_v0  ;;  %v3109_v63 = vld [vmem:[%s4499_s2 + $0xf4] sm:$0xf0]  ;;  %v3108_v0 = vld [vmem:[%s4499_s2 + $0xf4] sm:$0xf] }
 0x141   : > { %1413 = vmatpush.bf16.msrb.mxu2 %v2652_v11  ;;  %v3130_v11 = vld [vmem:[%s4499_s2 + $0x1ac] sm:$0xf] }
 0x185   : > { %v3790_v3 = vpop.f32.mrf.mxu2  ;;  %v3792_v4 = vpop.f32.mrf.mxu3 }
 0x18d   : > { %v3846_v33 = vpop.f32.mrf.mxu2  ;;  %v3848_v34 = vpop.f32.mrf.mxu3 }
 0x195   : > { %v956_v56 = vpop.f32.mrf.mxu2  ;;  %v979_v57 = vpop.f32.mrf.mxu3 }
 0x196   : > { %v985_v58 = vmax.f32 %v3790_v3, %v956_v56  ;;  %v986_v59 = vmax.f32 %v3792_v4, %v979_v57  ;;  %v2599_v3 = vld [vmem:[%s4499_s2 + $0xa0] sm:$0xf0]  ;;  %v2647_v4 = vld [vmem:[%s4499_s2 + $0x10] sm:$0xf]  ;;  %v3120_v56 = vld [vmem:[%s4499_s2 + $0x154] sm:$0xf]  ;;  %v2761_v57 = vor.u32 %v3121_v55, %v2760_v54 }
 0x197   : > { %v2602_v9 = vor.u32 %v3098_v2, %v2599_v3  ;;  %v2648_v10 = vor.u32 %v3083_v5, %v2647_v4  ;;  %v2752_v2 = vld [vmem:[%s4499_s2 + $0x140] sm:$0xf]  ;;  %v3119_v3 = vld [vmem:[%s4499_s2 + $0x144] sm:$0xf0]  ;;  %v3118_v4 = vld [vmem:[%s4499_s2 + $0x144] sm:$0xf] }
 0x198   : > { %1042 = vmatmul.f32.vlgmr.msrb.gmra.mxu0 %v985_v58  ;;  %2530 = vmatmul.msk.f32.vlgmr.msrb.gmra.mxu1 %vm1019_vm7, %v986_v59  ;;  %v2753_v5 = vor.u32 %v3119_v3, %v2752_v2  ;;  %v2722_v54 = vld [vmem:[%s4499_s2 + $0x108] sm:$0xf0]  ;;  %v2785_v55 = vld [vmem:[%s4499_s2 + $0x168] sm:$0xf]  ;;  %v2714_v2 = vld [vmem:[%s4499_s2 + $0xf8] sm:$0xf0] }
 0x199   : > { %1119 = vmatmul.f32.vlgmr.msra.gmra.mxu2 %v985_v58  ;;  %2562 = vmatmul.msk.f32.vlgmr.msra.gmra.mxu3 %vm1019_vm7, %v986_v59  ;;  %v2762_v58 = vld [vmem:[%s4499_s2 + $0x158] sm:$0xf0]  ;;  %v2825_v59 = vld [vmem:[%s4499_s2 + $0x1b8] sm:$0xf]  ;;  %v2717_v3 = vor.u32 %v3108_v0, %v2714_v2  ;;  %v2874_v0 = vld [vmem:[%s4499_s2 + $0x200] sm:$0xf] }
 0x19a   : > { %1302 = vmatpush.bf16.msra.mxu1 %v2602_v9  ;;  %1400 = vmatpush.bf16.msrb.mxu3 %v2648_v10  ;;  %v2765_v61 = vor.u32 %v3120_v56, %v2762_v58  ;;  %v2826_v62 = vor.u32 %v3133_v60, %v2825_v59  ;;  %v2757_v9 = vor.u32 %v3118_v4, %v2754_v6  ;;  %v3123_v56 = vld [vmem:[%s4499_s2 + $0x16c] sm:$0xf0]  ;;  %v3122_v59 = vld [vmem:[%s4499_s2 + $0x16c] sm:$0xf]  ;;  %v2787_v60 = vld [vmem:[%s4499_s2 + $0x170] sm:$0xf0] }
 0x19b   : > { %v2818_v10 = vor.u32 %v3131_v8, %v2817_v7  ;;  %v2786_v58 = vor.u32 %v3123_v56, %v2785_v55  ;;  %v3140_v2 = vld [vmem:[%s4499_s2 + $0x204] sm:$0xf] }
 0x19d   : > { %v959_v12 = vpop.f32.mrf.mxu2  ;;  %v982_v13 = vpop.f32.mrf.mxu3 }
 0x19e   : > { %v987_v14 = vmax.f32 %v3846_v33, %v959_v12  ;;  %v988_v15 = vmax.f32 %v3848_v34, %v982_v13  ;;  %v2644_v33 = vor.u32 %v3080_v28, %v2641_v29  ;;  %v2581_v34 = vld [vmem:[%s4499_s2 + $0x78] sm:$0xf]  ;;  %1303 = vmatpush.bf16.msra.mxu1 %v2594_v26  ;;  %1401 = vmatpush.bf16.msrb.mxu3 %v2640_v27  ;;  %v2819_v12 = vld [vmem:[%s4499_s2 + $0x1b0] sm:$0xf0]  ;;  %v2736_v26 = vld [vmem:[%s4499_s2 + $0x120] sm:$0xf] }
 0x19f   : > { %v2582_v41 = vor.u32 %v3095_v35, %v2581_v34  ;;  %v2822_v13 = vor.u32 %v3130_v11, %v2819_v12  ;;  %v3115_v27 = vld [vmem:[%s4499_s2 + $0x124] sm:$0xf0]  ;;  %v3114_v28 = vld [vmem:[%s4499_s2 + $0x124] sm:$0xf]  ;;  %v2802_v34 = vor.u32 %v3127_v32, %v2801_v31  ;;  %v3126_v35 = vld [vmem:[%s4499_s2 + $0x18c] sm:$0xf] }
 0x1a0   : > { %1045 = vmatmul.f32.gmra.mxu0 %v987_v14  ;;  %2531 = vmatmul.msk.f32.gmra.mxu1 %vm1019_vm7, %v988_v15  ;;  %v2737_v29 = vor.u32 %v3115_v27, %v2736_v26  ;;  %v2806_v37 = vor.u32 %v3126_v35, %v2803_v36  ;;  %v1741_v26 = vunpack.c.h.b16 %v2855_v21 }
 0x1a1   : > { %1122 = vmatmul.f32.gmra.mxu2 %v987_v14  ;;  %2563 = vmatmul.msk.f32.gmra.mxu3 %vm1019_vm7, %v988_v15  ;;  %v2744_v14 = vld [vmem:[%s4499_s2 + $0x130] sm:$0xf]  ;;  %v3117_v15 = vld [vmem:[%s4499_s2 + $0x134] sm:$0xf0] }
 0x1a2   : > { %1414 = vmatpush.bf16.msrb.mxu2 %v2644_v33  ;;  %1652 = vmatpush.bf16.msra.mxu3 %v1647_v39  ;;  %v2745_v16 = vor.u32 %v3117_v15, %v2744_v14  ;;  %v2741_v33 = vor.u32 %v3114_v28, %v2738_v30  ;;  %v3113_v39 = vld [vmem:[%s4499_s2 + $0x114] sm:$0xf0]  ;;  %v1757_v31 = vpack.c.b16 %v1741_v26, %v1741_v26 }
 0x1a3   : > { %1291 = vmatpush.bf16.msra.mxu0 %v2582_v41  ;;  %1304 = vmatpush.bf16.msra.mxu1 %v2586_v43  ;;  %v2729_v41 = vor.u32 %v3113_v39, %v2728_v38  ;;  %v2793_v43 = vld [vmem:[%s4499_s2 + $0x178] sm:$0xf]  ;;  %v2906_v39 = vld [vmem:[%s4499_s2 + $0x240] sm:$0xf] }
 0x1a4   : > { %v2794_v46 = vor.u32 %v3125_v44, %v2793_v43  ;;  %v1779_v38 = vsel %vm1277_vm6, %v1757_v31, 0 }
 0x1a6   : > { %1665 = vmatpush.bf16.msra.mxu2 %v1650_v40  ;;  %1653 = vmatpush.bf16.msra.mxu3 %v2834_v51  ;;  %v3112_v40 = vld [vmem:[%s4499_s2 + $0x114] sm:$0xf]  ;;  %v3111_v51 = vld [vmem:[%s4499_s2 + $0x104] sm:$0xf0] }
 0x1a7   : > { %1521 = vmatpush.bf16.msrb.mxu0 %v1516_v49  ;;  %1534 = vmatpush.bf16.msrb.mxu1 %v1519_v50  ;;  %v2733_v45 = vor.u32 %v3112_v40, %v2730_v42  ;;  %v2798_v49 = vor.u32 %v3124_v47, %v2795_v48  ;;  %v2720_v50 = vld [vmem:[%s4499_s2 + $0x100] sm:$0xf]  ;;  %v3149_v40 = vld [vmem:[%s4499_s2 + $0x244] sm:$0xf0]  ;;  %v2908_v42 = vld [vmem:[%s4499_s2 + $0x248] sm:$0xf0] }
 0x1a8   : > { %v2907_v43 = vor.u32 %v3149_v40, %v2906_v39  ;;  %v3146_v47 = vld [vmem:[%s4499_s2 + $0x234] sm:$0xf]  ;;  %v2900_v48 = vld [vmem:[%s4499_s2 + $0x238] sm:$0xf0]  ;;  %v1921_v39 = vld [vmem:[%s4505_s8 + $0x60] sm:$0xff] }
 0x1a9   : > { %v2932_v40 = vld [vmem:[%s4505_s8 + $0x100] sm:$0xff] }
 0x1aa   : > { %1666 = vmatpush.bf16.msra.mxu2 %v2838_v53  ;;  %1654 = vmatpush.bf16.msra.mxu3 %v2826_v62  ;;  %v2721_v53 = vor.u32 %v3111_v51, %v2720_v50  ;;  %v2712_v62 = vld [vmem:[%s4499_s2 + $0xf0] sm:$0xf]  ;;  %v2903_v50 = vor.u32 %v3146_v47, %v2900_v48  ;;  %v2890_v51 = vld [vmem:[%s4499_s2 + $0x220] sm:$0xf] }
 0x1ab   : > { %1522 = vmatpush.bf16.msrb.mxu0 %v2761_v57  ;;  %1535 = vmatpush.bf16.msrb.mxu1 %v2765_v61  ;;  %v2725_v57 = vor.u32 %v3110_v52, %v2722_v54  ;;  %v2790_v61 = vor.u32 %v3122_v59, %v2787_v60  ;;  %v3145_v52 = vld [vmem:[%s4499_s2 + $0x224] sm:$0xf0]  ;;  %v2892_v54 = vld [vmem:[%s4499_s2 + $0x228] sm:$0xf0]  ;;  %v3142_v59 = vld [vmem:[%s4499_s2 + $0x214] sm:$0xf] }
 0x1ac   : > { %v2891_v55 = vor.u32 %v3145_v52, %v2890_v51  ;;  %v2884_v60 = vld [vmem:[%s4499_s2 + $0x218] sm:$0xf0] }
 0x1ae   : > { %1667 = vmatpush.bf16.msra.mxu2 %v2830_v1  ;;  %1655 = vmatpush.bf16.msra.mxu3 %v2818_v10  ;;  %v2713_v1 = vor.u32 %v3109_v63, %v2712_v62  ;;  %v2887_v63 = vor.u32 %v3142_v59, %v2884_v60 }
 0x1af   : > { %1523 = vmatpush.bf16.msrb.mxu0 %v2753_v5  ;;  %1536 = vmatpush.bf16.msrb.mxu1 %v2757_v9 }
 0x1b2   : > { %1668 = vmatpush.bf16.msra.mxu2 %v2822_v13  ;;  %1656 = vmatpush.bf16.msra.mxu3 %v2810_v24 }
 0x1b3   : > { %1524 = vmatpush.bf16.msrb.mxu0 %v2745_v16  ;;  %1537 = vmatpush.bf16.msrb.mxu1 %v2749_v20 }
 0x1b6   : > { %1669 = vmatpush.bf16.msra.mxu2 %v2814_v25  ;;  %1657 = vmatpush.bf16.msra.mxu3 %v2802_v34  ;;  %v1740_v25 = vunpack.c.l.b16 %v2855_v21 }
 0x1b7   : > { %1525 = vmatpush.bf16.msrb.mxu0 %v2737_v29  ;;  %1538 = vmatpush.bf16.msrb.mxu1 %v2741_v33 }
 0x1b8   : > { %v1756_v30 = vpack.c.b16 %v1740_v25, %v1740_v25 }
 0x1ba   : > { %1670 = vmatpush.bf16.msra.mxu2 %v2806_v37  ;;  %1658 = vmatpush.bf16.msra.mxu3 %v2794_v46  ;;  %v1776_v37 = vsel %vm1277_vm6, %v1756_v30, 0  ;;  %v3147_v46 = vld [vmem:[%s4499_s2 + $0x234] sm:$0xf0] }
 0x1bb   : > { %1526 = vmatpush.bf16.msrb.mxu0 %v2729_v41  ;;  %1539 = vmatpush.bf16.msrb.mxu1 %v2733_v45  ;;  %v3148_v41 = vld [vmem:[%s4499_s2 + $0x244] sm:$0xf]  ;;  %v2898_v45 = vld [vmem:[%s4499_s2 + $0x230] sm:$0xf] }
 0x1bc   : > { %v2911_v44 = vor.u32 %v3148_v41, %v2908_v42  ;;  %v1920_v41 = vld [vmem:[%s4505_s8 + $0x58] sm:$0xff] }
 0x1bd   : > { %v2931_v42 = vld [vmem:[%s4505_s8 + $0xf8] sm:$0xff] }
 0x1be   : > { %1671 = vmatpush.bf16.msra.mxu2 %v2798_v49  ;;  %1659 = vmatpush.bf16.msra.mxu3 %v2786_v58  ;;  %v2899_v49 = vor.u32 %v3147_v46, %v2898_v45  ;;  %v3143_v58 = vld [vmem:[%s4499_s2 + $0x214] sm:$0xf0]  ;;  %v1919_v45 = vld [vmem:[%s4505_s8 + $0x50] sm:$0xff] }
 0x1bf   : > { %1527 = vmatpush.bf16.msrb.mxu0 %v2721_v53  ;;  %1540 = vmatpush.bf16.msrb.mxu1 %v2725_v57  ;;  %v3144_v53 = vld [vmem:[%s4499_s2 + $0x224] sm:$0xf]  ;;  %v2882_v57 = vld [vmem:[%s4499_s2 + $0x210] sm:$0xf] }
 0x1c0   : > { %v2895_v56 = vor.u32 %v3144_v53, %v2892_v54  ;;  %v2883_v62 = vor.u32 %v3143_v58, %v2882_v57  ;;  %v2930_v46 = vld [vmem:[%s4505_s8 + $0xf0] sm:$0xff]  ;;  %v1809_v53 = vld [vmem:[%s4501_s4] sm:$0x3] }
 0x1c1   : > { %v1812_v57 = vperm.slane %v1809_v53, 1 }
 0x1c2   : > { %1672 = vmatpush.bf16.msra.mxu2 %v2790_v61 }
 0x1c3   : > { %1528 = vmatpush.bf16.msrb.mxu0 %v2713_v1  ;;  %1541 = vmatpush.bf16.msrb.mxu1 %v2717_v3  ;;  %v3141_v1 = vld [vmem:[%s4499_s2 + $0x204] sm:$0xf0]  ;;  %v2876_v3 = vld [vmem:[%s4499_s2 + $0x208] sm:$0xf0] }
 0x215   : > { %v1043_v4 = vpop.f32.mrf.mxu0  ;;  %v1066_v5 = vpop.f32.mrf.mxu1 }
 0x216   : > { %v1067_v8 = vadd.f32 %v1066_v5, %v1043_v4  ;;  %v2875_v4 = vor.u32 %v3141_v1, %v2874_v0  ;;  %v2879_v5 = vor.u32 %v3140_v2, %v2876_v3  ;;  %v1817_v0 = vld [vmem:[%s4504_s7] sm:$0xf]  ;;  %v2916_v3 = vld [vmem:[%s4504_s7 + $0x4] sm:$0xf] }
 0x21c   : > { %v1120_v6 = vpop.f32.mrf.mxu2  ;;  %v1143_v7 = vpop.f32.mrf.mxu3 }
 0x21d   : > { %v1144_v9 = vadd.f32 %v1143_v7, %v1120_v6  ;;  %v1046_v12 = vpop.f32.mrf.mxu0  ;;  %v1069_v13 = vpop.f32.mrf.mxu1  ;;  %v2866_v6 = vld [vmem:[%s4499_s2 + $0x1f0] sm:$0xf]  ;;  %v3139_v7 = vld [vmem:[%s4499_s2 + $0x1f4] sm:$0xf0] }
 0x21e   : > { %v1070_v17 = vadd.f32 %v1069_v13, %v1046_v12  ;;  %v2858_v12 = vld [vmem:[%s4499_s2 + $0x1e0] sm:$0xf]  ;;  %v3137_v13 = vld [vmem:[%s4499_s2 + $0x1e4] sm:$0xf0] }
 0x21f   : > { %v1149_v10 = vmax.f32 %v1067_v8, %v1144_v9  ;;  %v3138_v8 = vld [vmem:[%s4499_s2 + $0x1f4] sm:$0xf]  ;;  %v2868_v9 = vld [vmem:[%s4499_s2 + $0x1f8] sm:$0xf0] }
 0x221   : > { %v1151_v11 = vmax.f32 %v1149_v10, 0.0  ;;  %v2867_v10 = vor.u32 %v3139_v7, %v2866_v6  ;;  %v1916_v6 = vld [vmem:[%s4505_s8 + $0x38] sm:$0xff] }
 0x222   : > { %v2927_v7 = vld [vmem:[%s4505_s8 + $0xd8] sm:$0xff] }
 0x223   : > { %v1153_v14 = vpack.c.bf16 %v1151_v11, %v1151_v11  ;;  %v2871_v11 = vor.u32 %v3138_v8, %v2868_v9  ;;  %v1915_v8 = vld [vmem:[%s4505_s8 + $0x30] sm:$0xff] }
 0x224   : > { %v1123_v15 = vpop.f32.mrf.mxu2  ;;  %v1146_v16 = vpop.f32.mrf.mxu3  ;;  %v2926_v9 = vld [vmem:[%s4505_s8 + $0xd0] sm:$0xff] }
 0x225   : > { %v1147_v18 = vadd.f32 %v1146_v16, %v1123_v15  ;;  %2693 = vmatmul.msk.bf16.vlgmr.msrb.gmra.mxu3 %vm1273_vm8, %v1153_v14  ;;  %2694 = vmatmul.msk.bf16.vlgmr.msrb.gmra.mxu2 %vm1273_vm8, %v1153_v14  ;;  %v1188_v23 = vunpack.c.l.b16 %v1153_v14  ;;  %v3136_v14 = vld [vmem:[%s4499_s2 + $0x1e4] sm:$0xf]  ;;  %v2860_v15 = vld [vmem:[%s4499_s2 + $0x1e8] sm:$0xf0]  ;;  %v2859_v16 = vor.u32 %v3137_v13, %v2858_v12  ;;  %v1927_v13 = vld [vmem:[%s4505_s8 + $0x90] sm:$0xff] }
 0x226   : > { %v1914_v12 = vld [vmem:[%s4505_s8 + $0x28] sm:$0xff] }
 0x227   : > { %v1150_v19 = vmax.f32 %v1070_v17, %v1147_v18  ;;  %v2863_v17 = vor.u32 %v3136_v14, %v2860_v15  ;;  %v2925_v14 = vld [vmem:[%s4505_s8 + $0xc8] sm:$0xff]  ;;  %v2938_v15 = vld [vmem:[%s4505_s8 + $0x130] sm:$0xff] }
 0x229   : > { %v1152_v20 = vmax.f32 %v1150_v19, 0.0 }
 0x22b   : > { %v1154_v22 = vpack.c.bf16 %v1152_v20, %v1152_v20 }
 0x22d   : > { %v1189_v24 = vunpack.c.l.b16 %v1154_v22 }
 0x22f   : > { %v4146_v27 = vpack.c.b16 %v1189_v24, %v1188_v23 }
 0x231   : > { %v1194_v28 = vshll.u32 %v4146_v27, 16  ;;  %v1192_v29 = vshrl.u32 %v4146_v27, 16  ;;  %v1436_v61 = vrot.slane %v4146_v27, 1  ;;  %v1696_v18 = vrot.slane %v4146_v27, 2  ;;  %v1924_v27 = vld [vmem:[%s4505_s8 + $0x78] sm:$0xff] }
 0x233   : > { %v1196_v32 = vrot.slane %v1194_v28, 1  ;;  %v1565_v33 = vrot.slane %v1192_v29, 1  ;;  %v1566_v34 = vrot.slane %v1194_v28, 2 }
 0x235   : > { %v1197_v35 = vor.u32 %v1196_v32, %v1192_v29  ;;  %v1567_v36 = vor.u32 %v1566_v34, %v1565_v33  ;;  %v2935_v34 = vld [vmem:[%s4505_s8 + $0x118] sm:$0xff] }
 0x237   : > { %2635 = vmatmul.msk.bf16.vlgmr.msra.gmra.mxu0 %vm1273_vm8, %v1197_v35  ;;  %2636 = vmatmul.msk.bf16.vlgmr.msra.gmra.mxu1 %vm1273_vm8, %v1197_v35  ;;  %v1923_v35 = vld [vmem:[%s4505_s8 + $0x70] sm:$0xff] }
 0x238   : > { %2839 = vmatmul.msk.bf16.vlgmr.msra.gmra.mxu3 %vm1273_vm8, %v1567_v36  ;;  %2840 = vmatmul.msk.bf16.vlgmr.msra.gmra.mxu2 %vm1273_vm8, %v1567_v36  ;;  %v2934_v36 = vld [vmem:[%s4505_s8 + $0x110] sm:$0xff] }
 0x239   : > { %1781 = vmatpush.bf16.msra.mxu0 %v1776_v37  ;;  %1794 = vmatpush.bf16.msra.mxu1 %v1779_v38  ;;  %v1922_v37 = vld [vmem:[%s4505_s8 + $0x68] sm:$0xff] }
 0x23a   : > { %v2933_v38 = vld [vmem:[%s4505_s8 + $0x108] sm:$0xff] }
 0x23d   : > { %1782 = vmatpush.bf16.msra.mxu0 %v2907_v43  ;;  %1795 = vmatpush.bf16.msra.mxu1 %v2911_v44 }
 0x241   : > { %1783 = vmatpush.bf16.msra.mxu0 %v2899_v49  ;;  %1796 = vmatpush.bf16.msra.mxu1 %v2903_v50  ;;  %v1918_v49 = vld [vmem:[%s4505_s8 + $0x48] sm:$0xff] }
 0x242   : > { %v2929_v50 = vld [vmem:[%s4505_s8 + $0xe8] sm:$0xff] }
 0x245   : > { %1784 = vmatpush.bf16.msra.mxu0 %v2891_v55  ;;  %1797 = vmatpush.bf16.msra.mxu1 %v2895_v56  ;;  %v1811_v55 = vperm.slane %v1809_v53, 0  ;;  %v3155_v53 = vld [vmem:[%s4506_s9 + $0x28] sm:$0xff] }
 0x247   : > { %2766 = vmatmul.msk.bf16.vlgmr.msrb.gmra.mxu0 %vm1273_vm8, %v1436_v61  ;;  %2767 = vmatmul.msk.bf16.vlgmr.msrb.gmra.mxu1 %vm1273_vm8, %v1436_v61 }
 0x249   : > { %1785 = vmatpush.bf16.msra.mxu0 %v2883_v62  ;;  %1798 = vmatpush.bf16.msra.mxu1 %v2887_v63 }
 0x24d   : > { %1786 = vmatpush.bf16.msra.mxu0 %v2875_v4  ;;  %1799 = vmatpush.bf16.msra.mxu1 %v2879_v5  ;;  %v1917_v4 = vld [vmem:[%s4505_s8 + $0x40] sm:$0xff] }
 0x24e   : > { %v2928_v5 = vld [vmem:[%s4505_s8 + $0xe0] sm:$0xff] }
 0x251   : > { %1787 = vmatpush.bf16.msra.mxu0 %v2867_v10  ;;  %1800 = vmatpush.bf16.msra.mxu1 %v2871_v11  ;;  %v1928_v10 = vld [vmem:[%s4505_s8 + $0x98] sm:$0xff] }
 0x252   : > { %v2939_v11 = vld [vmem:[%s4505_s8 + $0x138] sm:$0xff] }
 0x255   : > { %1788 = vmatpush.bf16.msra.mxu0 %v2859_v16  ;;  %1801 = vmatpush.bf16.msra.mxu1 %v2863_v17  ;;  %v1913_v16 = vld [vmem:[%s4505_s8 + $0x20] sm:$0xff] }
 0x256   : > { %v2924_v17 = vld [vmem:[%s4505_s8 + $0xc0] sm:$0xff] }
 0x258   : > { %2912 = vmatmul.msk.bf16.vlgmr.msra.gmra.mxu0 %vm1273_vm8, %v1696_v18  ;;  %2913 = vmatmul.msk.bf16.vlgmr.msra.gmra.mxu1 %vm1273_vm8, %v1696_v18  ;;  %v1912_v18 = vld [vmem:[%s4505_s8 + $0x18] sm:$0xff] }
 0x259   : > { %1933 = vmatpush.msrb.mxu0 %v1924_v27  ;;  %1994 = vmatpush.msrb.mxu1 %v2935_v34 }
 0x25b   : > { %1934 = vmatpush.msrb.mxu0 %v1923_v35  ;;  %1995 = vmatpush.msrb.mxu1 %v2934_v36 }
 0x25d   : > { %1935 = vmatpush.msrb.mxu0 %v1922_v37  ;;  %1996 = vmatpush.msrb.mxu1 %v2933_v38  ;;  %v3153_v38 = vld [vmem:[%s4506_s9 + $0x18] sm:$0xff] }
 0x25f   : > { %1936 = vmatpush.msrb.mxu0 %v1921_v39  ;;  %1997 = vmatpush.msrb.mxu1 %v2932_v40  ;;  %v3164_v39 = vld [vmem:[%s4506_s9 + $0x70] sm:$0xff] }
 0x260   : > { %v3152_v40 = vld [vmem:[%s4506_s9 + $0x10] sm:$0xff] }
 0x261   : > { %1937 = vmatpush.msrb.mxu0 %v1920_v41  ;;  %1998 = vmatpush.msrb.mxu1 %v2931_v42  ;;  %v3169_v41 = vld [vmem:[%s4506_s9 + $0x98] sm:$0xff]  ;;  %v3158_v42 = vld [vmem:[%s4506_s9 + $0x40] sm:$0xff] }
 0x263   : > { %1938 = vmatpush.msrb.mxu0 %v1919_v45  ;;  %1999 = vmatpush.msrb.mxu1 %v2930_v46  ;;  %v3168_v45 = vld [vmem:[%s4506_s9 + $0x90] sm:$0xff]  ;;  %v3157_v46 = vld [vmem:[%s4506_s9 + $0x38] sm:$0xff] }
 0x265   : > { %1939 = vmatpush.msrb.mxu0 %v1918_v49  ;;  %2000 = vmatpush.msrb.mxu1 %v2929_v50  ;;  %v3167_v49 = vld [vmem:[%s4506_s9 + $0x88] sm:$0xff]  ;;  %v3156_v50 = vld [vmem:[%s4506_s9 + $0x30] sm:$0xff] }
 0x267   : > { %1940 = vmatpush.msrb.mxu0 %v1917_v4  ;;  %2001 = vmatpush.msrb.mxu1 %v2928_v5 }
 0x269   : > { %1941 = vmatpush.msrb.mxu0 %v1916_v6  ;;  %2002 = vmatpush.msrb.mxu1 %v2927_v7  ;;  %v2283_v7 = vld [vmem:[%s4508_s11 + $0x28] sm:$0xff] }
 0x26b   : > { %1942 = vmatpush.msrb.mxu0 %v1915_v8  ;;  %2003 = vmatpush.msrb.mxu1 %v2926_v9  ;;  %v2282_v8 = vld [vmem:[%s4508_s11 + $0x20] sm:$0xff]  ;;  %v2281_v9 = vld [vmem:[%s4508_s11 + $0x18] sm:$0xff] }
 0x26d   : > { %1943 = vmatpush.msrb.mxu0 %v1914_v12  ;;  %2004 = vmatpush.msrb.mxu1 %v2925_v14  ;;  %v2278_v12 = vld [vmem:[%s4508_s11] sm:$0xff] }
 0x26f   : > { %1944 = vmatpush.msrb.mxu0 %v1913_v16  ;;  %2005 = vmatpush.msrb.mxu1 %v2924_v17 }
 0x271   : > { %1945 = vmatpush.msrb.mxu0 %v1912_v18 }
 0x2a8   : > { %v1403_v19 = vpop.f32.mrf.mxu3  ;;  %v1416_v20 = vpop.f32.mrf.mxu2 }
 0x2b0   : > { %v1405_v21 = vpop.f32.mrf.mxu3  ;;  %v1418_v22 = vpop.f32.mrf.mxu2 }
 0x2b1   : > { %v2922_v21 = vld [vmem:[%s4505_s8 + $0xb0] sm:$0xff]  ;;  %v1926_v22 = vld [vmem:[%s4505_s8 + $0x88] sm:$0xff] }
 0x2b4   : > { %v1293_v23 = vpop.f32.mrf.mxu0  ;;  %v1306_v24 = vpop.f32.mrf.mxu1 }
 0x2b5   : > { %v1404_v47 = vadd.f32 %v1403_v19, %v1293_v23  ;;  %v1417_v48 = vadd.f32 %v1416_v20, %v1306_v24  ;;  %v2923_v19 = vld [vmem:[%s4505_s8 + $0xb8] sm:$0xff]  ;;  %v1911_v20 = vld [vmem:[%s4505_s8 + $0x10] sm:$0xff]  ;;  %v2937_v23 = vld [vmem:[%s4505_s8 + $0x128] sm:$0xff] }
 0x2b6   : > { %2006 = vmatpush.msrb.mxu1 %v2923_v19  ;;  %1946 = vmatpush.msrb.mxu0 %v1911_v20  ;;  %v1910_v24 = vld [vmem:[%s4505_s8 + $0x8] sm:$0xff] }
 0x2b8   : > { %2007 = vmatpush.msrb.mxu1 %v2922_v21  ;;  %1947 = vmatpush.msrb.mxu0 %v1910_v24  ;;  %v2275_v21 = vld [vmem:[%s4507_s10] sm:$0x1] }
 0x2bb   : > { %v1661_v25 = vpop.f32.mrf.mxu3  ;;  %v1674_v26 = vpop.f32.mrf.mxu2 }
 0x2bc   : > { %v1295_v28 = vpop.f32.mrf.mxu0  ;;  %v1308_v29 = vpop.f32.mrf.mxu1 }
 0x2bd   : > { %v2921_v28 = vld [vmem:[%s4505_s8 + $0xa8] sm:$0xff]  ;;  %v1909_v29 = vld [vmem:[%s4505_s8] sm:$0xff] }
 0x2be   : > { %2008 = vmatpush.msrb.mxu1 %v2921_v28  ;;  %1948 = vmatpush.msrb.mxu0 %v1909_v29  ;;  %v2285_v28 = vld [vmem:[%s4509_s12] sm:$0x1] }
 0x2c0   : > { %2205 = vmatpush.bf16.msra.mxu0 %v3164_v39 }
 0x2c3   : > { %v1663_v30 = vpop.f32.mrf.mxu3  ;;  %v1676_v31 = vpop.f32.mrf.mxu2 }
 0x2c4   : > { %v1530_v32 = vpop.f32.mrf.mxu0  ;;  %v1543_v33 = vpop.f32.mrf.mxu1  ;;  %v2920_v30 = vld [vmem:[%s4505_s8 + $0xa0] sm:$0xff]  ;;  %v3159_v31 = vld [vmem:[%s4506_s9 + $0x48] sm:$0xff] }
 0x2c5   : > { %v1547_v51 = vadd.f32 %v1530_v32, %v1404_v47  ;;  %v1548_v52 = vadd.f32 %v1543_v33, %v1417_v48  ;;  %2009 = vmatpush.msrb.mxu1 %v2920_v30  ;;  %v3154_v32 = vld [vmem:[%s4506_s9 + $0x20] sm:$0xff] }
 0x2c6   : > { %v3162_v47 = vld [vmem:[%s4506_s9 + $0x60] sm:$0xff] }
 0x2c7   : > { %v1678_v54 = vadd.f32 %v1661_v25, %v1547_v51  ;;  %v1679_v56 = vadd.f32 %v1674_v26, %v1548_v52  ;;  %v1925_v25 = vld [vmem:[%s4505_s8 + $0x80] sm:$0xff]  ;;  %2264 = vmatpush.bf16.msra.mxu1 %v3169_v41  ;;  %v3161_v51 = vld [vmem:[%s4506_s9 + $0x58] sm:$0xff] }
 0x2c8   : > { %v2936_v26 = vld [vmem:[%s4505_s8 + $0x120] sm:$0xff] }
 0x2c9   : > { %v3150_v48 = vld [vmem:[%s4506_s9] sm:$0xff] }
 0x2ca   : > { %v3166_v52 = vld [vmem:[%s4506_s9 + $0x80] sm:$0xff] }
 0x2cb   : > { %2265 = vmatpush.bf16.msra.mxu1 %v3168_v45 }
 0x2cc   : > { %v1532_v43 = vpop.f32.mrf.mxu0  ;;  %v1545_v44 = vpop.f32.mrf.mxu1 }
 0x2cd   : > { %v3163_v43 = vld [vmem:[%s4506_s9 + $0x68] sm:$0xff] }
 0x2ce   : > { %v3151_v44 = vld [vmem:[%s4506_s9 + $0x8] sm:$0xff]  ;;  %2206 = vmatpush.bf16.msra.mxu0 %v3163_v43 }
 0x2cf   : > { %2266 = vmatpush.bf16.msra.mxu1 %v3167_v49 }
 0x2d2   : > { %2207 = vmatpush.bf16.msra.mxu0 %v3162_v47 }
 0x2d3   : > { %2267 = vmatpush.bf16.msra.mxu1 %v3166_v52 }
 0x2d5   : > { %v1790_v58 = vpop.f32.mrf.mxu0  ;;  %v1803_v59 = vpop.f32.mrf.mxu1 }
 0x2d6   : > { %v1807_v60 = vadd.f32 %v1790_v58, %v1678_v54  ;;  %v1808_v61 = vadd.f32 %v1803_v59, %v1679_v56  ;;  %2208 = vmatpush.bf16.msra.mxu0 %v3161_v51  ;;  %v3160_v54 = vld [vmem:[%s4506_s9 + $0x50] sm:$0xff] }
 0x2d7   : > { %v2284_v56 = vld [vmem:[%s4508_s11 + $0x30] sm:$0x3] }
 0x2d8   : > { %v1815_v62 = vadd.f32 %v1811_v55, %v1807_v60  ;;  %v1816_v63 = vadd.f32 %v1812_v57, %v1808_v61  ;;  %v3165_v55 = vld [vmem:[%s4506_s9 + $0x78] sm:$0xff] }
 0x2d9   : > { %2268 = vmatpush.bf16.msra.mxu1 %v3165_v55 }
 0x2da   : > { %1837 = vmatpush.msrb.mxu3 %v1815_v62  ;;  %1857 = vmatpush.msrb.mxu2 %v1816_v63 }
 0x2db   : > { %2915 = vmatmul.msk.f32.vlgmr.msrb.gmra.mxu2 %vm1818_vm9, %v1817_v0  ;;  %2914 = vmatmul.msk.f32.vlgmr.msrb.gmra.mxu3 %vm1818_vm9, %v1817_v0 }
 0x2dc   : > { %1882 = vmatpush.msra.mxu3 %v1815_v62  ;;  %1902 = vmatpush.msra.mxu2 %v1816_v63 }
 0x2dd   : > { %v1792_v1 = vpop.f32.mrf.mxu0  ;;  %v1805_v2 = vpop.f32.mrf.mxu1  ;;  %2209 = vmatpush.bf16.msra.mxu0 %v3160_v54 }
 0x2de   : > { %1965 = vmatpush.msrb.mxu3 %v1928_v10  ;;  %2026 = vmatpush.msrb.mxu2 %v2939_v11  ;;  %v2280_v10 = vld [vmem:[%s4508_s11 + $0x10] sm:$0xff]  ;;  %v2279_v11 = vld [vmem:[%s4508_s11 + $0x8] sm:$0xff] }
 0x2e0   : > { %1966 = vmatpush.msrb.mxu3 %v1927_v13  ;;  %2027 = vmatpush.msrb.mxu2 %v2938_v15 }
 0x2e2   : > { %1967 = vmatpush.msrb.mxu3 %v1926_v22  ;;  %2028 = vmatpush.msrb.mxu2 %v2937_v23 }
 0x2e3   : > { %2918 = vmatmul.msk.f32.vlgmr.msra.gmra.mxu2 %vm1818_vm9, %v2916_v3  ;;  %2917 = vmatmul.msk.f32.vlgmr.msra.gmra.mxu3 %vm1818_vm9, %v2916_v3 }
 0x2e4   : > { %1968 = vmatpush.msrb.mxu3 %v1925_v25  ;;  %2029 = vmatpush.msrb.mxu2 %v2936_v26 }
 0x2e6   : > { %2101 = vmatpush.bf16.msra.mxu3 %v3159_v31  ;;  %2147 = vmatpush.bf16.msra.mxu2 %v3154_v32 }
 0x2ea   : > { %2148 = vmatpush.bf16.msra.mxu2 %v3153_v38  ;;  %2102 = vmatpush.bf16.msra.mxu3 %v3158_v42 }
 0x2ee   : > { %2149 = vmatpush.bf16.msra.mxu2 %v3152_v40  ;;  %2103 = vmatpush.bf16.msra.mxu3 %v3157_v46 }
 0x2f2   : > { %2150 = vmatpush.bf16.msra.mxu2 %v3151_v44  ;;  %2104 = vmatpush.bf16.msra.mxu3 %v3156_v50 }
 0x2f6   : > { %2151 = vmatpush.bf16.msra.mxu2 %v3150_v48  ;;  %2105 = vmatpush.bf16.msra.mxu3 %v3155_v53 }
 0x35e   : > { %v1859_v33 = vpop.f32.mrf.mxu2  ;;  %v1839_v27 = vpop.f32.mrf.mxu3 }
 0x366   : > { %v1904_v34 = vpop.f32.mrf.mxu2  ;;  %v1884_v36 = vpop.f32.mrf.mxu3 }
 0x367   : > { %v1908_v35 = vmax.f32 %v1859_v33, %v1904_v34  ;;  %v1907_v37 = vmax.f32 %v1839_v27, %v1884_v36 }
 0x369   : > { %2919 = vmatmul.msk.f32.vlgmr.msrb.gmra.mxu3 %vm1929_vm10, %v1908_v35  ;;  %2940 = vmatmul.msk.f32.vlgmr.msrb.gmra.mxu2 %vm1929_vm10, %v1908_v35 }
 0x36a   : > { %1949 = vmatmul.f32.vlgmr.msrb.gmra.mxu0 %v1907_v37  ;;  %2010 = vmatmul.f32.vlgmr.msrb.gmra.mxu1 %v1907_v37 }
 0x36b   : > { %3055 = vmatpush.msk.msrb.mxu3 %vm2290_vm11, %v2284_v56 }
 0x36d   : > { %2304 = vmatpush.msrb.mxu3 %v2283_v7 }
 0x36f   : > { %2305 = vmatpush.msrb.mxu3 %v2282_v8 }
 0x371   : > { %2306 = vmatpush.msrb.mxu3 %v2281_v9 }
 0x373   : > { %2307 = vmatpush.msrb.mxu3 %v2280_v10 }
 0x375   : > { %2308 = vmatpush.msrb.mxu3 %v2279_v11 }
 0x377   : > { %2309 = vmatpush.msrb.mxu3 %v2278_v12 }
 0x3e7   : > { %v1950_v57 = vpop.f32.mrf.mxu0  ;;  %v2011_v58 = vpop.f32.mrf.mxu1 }
 0x3ec   : > { %v1970_v59 = vpop.f32.mrf.mxu3  ;;  %v2031_v60 = vpop.f32.mrf.mxu2 }
 0x3ed   : > { %v1971_v61 = vadd.f32 %v1970_v59, %v1950_v57  ;;  %v2032_v62 = vadd.f32 %v2031_v60, %v2011_v58 }
 0x3ef   : > { %v2034_v63 = vmax.f32 %v1971_v61, %v2032_v62 }
 0x3f1   : > { %v2035_v0 = vmax.f32 %v2034_v63, 0.0 }
 0x3f3   : > { %v2036_v1 = vpack.c.bf16 %v2035_v0, %v2035_v0 }
 0x3f5   : > { %v2059_v2 = vunpack.c.l.b16 %v2036_v1  ;;  %2992 = vmatmul.msk.bf16.vlgmr.msra.gmra.mxu2 %vm2094_vm12, %v2036_v1 }
 0x3f7   : > { %v2060_v3 = vpack.c.b16 %v2059_v2, %v2059_v2 }
 0x3f9   : > { %v2062_v4 = vshrl.u32 %v2060_v3, 16  ;;  %v2168_v5 = vrot.slane %v2060_v3, 1 }
 0x3fb   : > { %v2227_v6 = vrot.slane %v2062_v4, 1  ;;  %2971 = vmatmul.msk.bf16.vlgmr.msra.gmra.mxu3 %vm2094_vm12, %v2062_v4  ;;  %3023 = vmatmul.msk.bf16.vlgmr.msra.gmra.mxu0 %vm2094_vm12, %v2168_v5 }
 0x3fd   : > { %3054 = vmatmul.msk.bf16.vlgmr.msra.gmra.mxu1 %vm2094_vm12, %v2227_v6 }
 0x478   : > { %v2153_v13 = vpop.f32.mrf.mxu2  ;;  %v2211_v14 = vpop.f32.mrf.mxu0 }
 0x47a   : > { %v2270_v15 = vpop.f32.mrf.mxu1 }
 0x47e   : > { %v2107_v16 = vpop.f32.mrf.mxu3 }
 0x47f   : > { %v2154_v17 = vadd.f32 %v2153_v13, %v2107_v16 }
 0x480   : > { %v2155_v18 = vpop.f32.mrf.mxu2  ;;  %v2213_v19 = vpop.f32.mrf.mxu0 }
 0x481   : > { %v2215_v20 = vadd.f32 %v2211_v14, %v2154_v17 }
 0x482   : > { %v2272_v22 = vpop.f32.mrf.mxu1 }
 0x483   : > { %v2274_v23 = vadd.f32 %v2270_v15, %v2215_v20 }
 0x485   : > { %v2276_v24 = vadd.f32 %v2275_v21, %v2274_v23 }
 0x486   : > { %v2109_v25 = vpop.f32.mrf.mxu3 }
 0x487   : > { %v2277_v26 = vmax.f32 %v2276_v24, 0.0 }
 0x489   : > { %3056 = vmatmul.msk.f32.vlgmr.msrb.gmra.mxu3 %vm2286_vm13, %v2277_v26 }
 0x50c   : > { %v2311_v29 = vpop.f32.mrf.mxu3 }
 0x50d   : > { %v2312_v30 = vadd.f32 %v2311_v29, %v2285_v28 }
 0x50f   : > { %v2314_v31 = vmax.f32 %v2312_v30, 0.0 }
 0x511   : > { %v2316_v32 = vsel %vm2315_vm14, %v2314_v31, -inf }
 0x512   : > { %2317 = vmax.xlane.f32.xlu0 %v2316_v32 }
 0x585   : > { %v2318_v33 = vpop.xlane.xlu0 %2317 }
 0x586   : > { %v2319_v27 = vsub.f32 %v2314_v31, %v2318_v33 }
 0x588   : > { %v2320_v34 = vmul.f32 1.442695, %v2319_v27 }
 0x58a   : > { %3209 = vpow2.f32 %v2320_v34 }
 0x590   : > { %v3210_v35 = vpop.eup %3209 }
 0x591   : > { %v2322_v36 = vsel %vm2315_vm14, %v3210_v35, 0.0 }
 0x592   : > { %2323 = vadd.xlane.f32.xlu0 %v2322_v36 }
 0x605   : > { %v2324_v37 = vpop.xlane.xlu0 %2323 }
 0x606   : > { %3211 = vlog2.f32 %v2324_v37 }
 0x60c   : > { %v3212_v38 = vpop.eup %3211 }
 0x60d   : > { %v2326_v39 = vmul.f32 0.6931472, %v3212_v38 }
 0x60f   : > { %v2327_v40 = vadd.f32 %v2326_v39, %v2318_v33 }
 0x611   : > { %v2328_v41 = vsub.f32 %v2314_v31, %v2327_v40 }
 0x613   : > { %2329 = vst.msk [vmem:[%s432_s15] sm:$0x1] %vm2315_vm14, %v2328_v41 }
 0x614   : > { %3240 = shalt.err (!%p3237_p3)
}
 0x615   : > { %3170 = dma.vmem_to_hbm [thread:$0]  (%p3385_p5), %s2342_s17, 16, %s2344_s16, %s2331_s20  }
 0x616 PF: > { %p3176_p4 = scmp.ge.s32.totalorder %s3275_s28, 2  ;;  %s2355_s30 = sand.u32 1, %s3263_s25  }
 0x617   : > { %s2356_s15 = scalar_lea.sflag [#allocation3], %s2355_s30 }
 0x618   : > { %p3173_p7 = pnand %p3176_p4, %p3389_p6 }
 0x61a   : > { %p3174_p8 = pneg %p3173_p7 }
 0x61c   : > { %3258 = dma.done.wait (%p3174_p8), %s2356_s15, 16  }
 0x61d   : > { %3260 = vsyncadd (%p3174_p8), %s2356_s15, 4294967280  ;;  %s4522_s28 = sld [smem:[#allocation6_spill]]  ;;  %s4525_s25 = smov %s3267_s26 }
 0x61e   : > { %s4523_s21 = sld [smem:[#allocation5_spill]] }
 0x61f   : > { %s4524_s27 = sld [smem:[#allocation7_spill]] }
 0x623   : > { %p23_p9 = scmp.ge.s32.totalorder %s4522_s28, 4  }
 0x624   : > { %s4526_s26 = smov %s4523_s21 }
 0x625   :  { %25 = sbr.rel (!%p23_p9) target bundleno = 3 (0x3), region = 122 }
 0x62a   :  { %2361 = vsyncpa [#allocation3], 1 }
 0x62b   :  { %2363 = vsyncpa [#allocation3 + $0x1], 1 }

</bundles_post_ra>
